<compile_context>
chip_gen: v7x
topology: tpu7x:2x2x1
jax: 0.10.0
libtpu: 0.0.40
codegen_flags: <defaults>
</compile_context>

<pallas_src>
import functools

import jax
import jax.numpy as jnp
from jax.experimental import pallas as pl
from jax.experimental.pallas import tpu as pltpu

K = 3            # kernel_size
NEG_SLOPE = 0.2  # LeakyReLU slope


def _leaky(v):
    return jnp.where(v >= 0, v, NEG_SLOPE * v)


def _round_up(x, m):
    return (x + m - 1) // m * m


def _largest_divisor_leq(n, k):
    k = max(1, min(n, k))
    for d in range(k, 0, -1):
        if n % d == 0:
            return d
    return 1


def _device_kind():
    try:
        return jax.devices()[0].device_kind.lower()
    except Exception:
        return ""


def _double_conv_kernel(x_ref, w1_ref, b1_ref, w2_ref, b2_ref, o_ref, mid_ref, *,
                        offs, bblk, m_pad, m_real, w2c, w_real, lead, mstride):
    # x_ref  : (B, Cin_p, Pin)       bf16  flattened, spatially pre-padded input
    # w1_ref : (Cout_p, 9*Cin_p)     bf16
    # b1_ref : (Cout_p, 1)           f32
    # w2_ref : (Cout_p, 9*Cout_p)    bf16
    # b2_ref : (Cout_p, 1)           f32
    # o_ref  : (B, Cout_p, M_pad)    f32   lane-dense output
    # mid_ref: (Cout_p, B*MSTRIDE)   bf16  per-image [LEAD zeros | M_pad values | TRAIL] slabs

    # real-pixel mask: kills the 2 wrap columns per row and the M..M_pad lane padding
    t = jax.lax.broadcasted_iota(jnp.int32, (1, bblk * m_pad), 1) % m_pad
    mask = jnp.logical_and(t % w2c < w_real, t < m_real)

    # ---- conv1: im2col fully in bf16, ONE MXU matmul over K = 9*Cin_p ----
    p1 = jnp.concatenate(
        [jnp.concatenate([x_ref[b, :, off:off + m_pad] for b in range(bblk)], axis=1)
         for off in offs], axis=0)                                  # (9*Cin_p, B*M_pad) bf16
    a1 = jax.lax.dot_general(
        w1_ref[...], p1, dimension_numbers=(((1,), (0,)), ((), ())),
        preferred_element_type=jnp.float32)                         # (Cout_p, B*M_pad) f32
    a1 = jnp.where(mask, _leaky(a1 + b1_ref[...]), 0.0).astype(jnp.bfloat16)

    # ---- scatter a1 into the zero-haloed bf16 intermediate (all 128-lane-aligned stores) ----
    zhalo = jnp.zeros((mid_ref.shape[0], lead), jnp.bfloat16)
    for b in range(bblk):
        base = b * mstride
        mid_ref[:, base:base + lead] = zhalo
        mid_ref[:, base + lead + m_pad:base + mstride] = zhalo       # TRAIL == LEAD lanes
        mid_ref[:, base + lead:base + lead + m_pad] = a1[:, b * m_pad:(b + 1) * m_pad]

    # ---- conv2: same single fused bf16 matmul over K = 9*Cout_p ----
    shift = lead - w2c - 1
    p2 = jnp.concatenate(
        [jnp.concatenate(
            [mid_ref[:, b * mstride + shift + off:b * mstride + shift + off + m_pad]
             for b in range(bblk)], axis=1)
         for off in offs], axis=0)                                  # (9*Cout_p, B*M_pad) bf16
    a2 = jax.lax.dot_general(
        w2_ref[...], p2, dimension_numbers=(((1,), (0,)), ((), ())),
        preferred_element_type=jnp.float32)
    a2 = jnp.where(mask, _leaky(a2 + b2_ref[...]), 0.0)             # wrap/pad lanes -> exact 0

    for b in range(bblk):
        o_ref[b] = a2[:, b * m_pad:(b + 1) * m_pad].astype(o_ref.dtype)


def double_conv_pallas(x_nchw, w1, b1, w2, b2):
    """x: (N, Cin, H, W) f32; w1: (Cout, Cin, 3, 3); b1: (Cout,); w2: (Cout, Cout, 3, 3)."""
    N, Cin, H, W = x_nchw.shape
    Cout = w1.shape[0]
    W2 = W + 2
    M = H * W2                              # real flattened pixels per image (incl. wrap cols)
    M_pad = _round_up(M, 128)               # lane-dense pixel axis
    LEAD = 128                              # left zero halo of the intermediate (full lane tile)
    TRAIL = 128                             # right halo (covers the bottom-row taps)
    MSTRIDE = LEAD + M_pad + TRAIL
    offs = tuple(dy * W2 + dx for dy in range(K) for dx in range(K))

    kind = _device_kind()
    # bf16 sublane tile = 16; on v5* keep channel pad at 8 so K = 9*C_p <= 128 (128-deep MXU)
    c_pad = 8 if "v5" in kind else 16
    Cin_p = _round_up(Cin, c_pad)
    Cout_p = _round_up(Cout, c_pad)

    # batch block: one fused step on v5e/v6e; >=2 parallel steps on v7x (2 TensorCores/chip)
    target_steps = 2 if "v7" in kind else 1
    bblk = _largest_divisor_leq(N, max(1, N // target_steps))
    grid = (N // bblk,)

    Pin = _round_up(max((H + 3) * W2, offs[-1] + M_pad), 128)

    # ---- host-side glue (layout only; no big transposes) ----
    # spatial pad: 1 top/left/right, 2 bottom (extra zero row keeps the last wrap-tap in bounds)
    xp = jnp.pad(x_nchw, ((0, 0), (0, Cin_p - Cin), (1, 2), (1, 1)))
    x_flat = xp.reshape(N, Cin_p, (H + 3) * W2)
    x_flat = jnp.pad(x_flat, ((0, 0), (0, 0), (0, Pin - (H + 3) * W2))).astype(jnp.bfloat16)

    # NOTE: in a training loop, hoist this weight/bias packing out of the per-call path.
    def pack_w(w, ci, ci_p):
        wp = jnp.zeros((Cout_p, ci_p, K, K), w.dtype).at[:Cout, :ci].set(w)
        # column order = (dy, dx, cin)  <->  tap-major / channel-minor stacking in the kernel
        return jnp.transpose(wp, (0, 2, 3, 1)).reshape(Cout_p, K * K * ci_p).astype(jnp.bfloat16)

    w1_k = pack_w(w1, Cin, Cin_p)
    w2_k = pack_w(w2, Cout, Cout_p)
    b1_k = jnp.zeros((Cout_p, 1), jnp.float32).at[:Cout, 0].set(b1.astype(jnp.float32))
    b2_k = jnp.zeros((Cout_p, 1), jnp.float32).at[:Cout, 0].set(b2.astype(jnp.float32))

    kernel = functools.partial(
        _double_conv_kernel, offs=offs, bblk=bblk, m_pad=M_pad, m_real=M,
        w2c=W2, w_real=W, lead=LEAD, mstride=MSTRIDE)

    # explicit scoped-VMEM budget from the actual per-step footprint (+50% headroom)
    bytes_in = 2 * bblk * Cin_p * Pin * 2                    # double-buffered bf16 input block
    bytes_out = 2 * bblk * Cout_p * M_pad * 4                # double-buffered f32 output block
    bytes_w = 2 * (Cout_p * K * K * (Cin_p + Cout_p) * 2 + 2 * Cout_p * 4)
    bytes_mid = Cout_p * bblk * MSTRIDE * 2                  # bf16 intermediate scratch
    bytes_tmp = K * K * (Cin_p + Cout_p) * bblk * M_pad * 2 + 2 * Cout_p * bblk * M_pad * 4
    vmem_limit = int(1.5 * (bytes_in + bytes_out + bytes_w + bytes_mid + bytes_tmp)) + (4 << 20)
    vmem_limit = min(vmem_limit, 64 << 20)

    flops = 2 * N * M_pad * Cout_p * K * K * (Cin_p + Cout_p)
    bytes_accessed = (x_flat.size * 2 + N * Cout_p * M_pad * 4
                      + (w1_k.size + w2_k.size) * 2 + (b1_k.size + b2_k.size) * 4)

    out_flat = pl.pallas_call(
        kernel,
        out_shape=jax.ShapeDtypeStruct((N, Cout_p, M_pad), x_nchw.dtype),
        grid_spec=pltpu.PrefetchScalarGridSpec(
            num_scalar_prefetch=0,
            grid=grid,
            in_specs=[
                pl.BlockSpec((bblk, Cin_p, Pin), lambda n: (n, 0, 0)),
                pl.BlockSpec((Cout_p, K * K * Cin_p), lambda n: (0, 0)),
                pl.BlockSpec((Cout_p, 1), lambda n: (0, 0)),
                pl.BlockSpec((Cout_p, K * K * Cout_p), lambda n: (0, 0)),
                pl.BlockSpec((Cout_p, 1), lambda n: (0, 0)),
            ],
            out_specs=pl.BlockSpec((bblk, Cout_p, M_pad), lambda n: (n, 0, 0)),
            scratch_shapes=[pltpu.VMEM((Cout_p, bblk * MSTRIDE), jnp.bfloat16)],
        ),
        compiler_params=pltpu.CompilerParams(
            dimension_semantics=("parallel",),
            vmem_limit_bytes=vmem_limit),
        cost_estimate=pl.CostEstimate(
            flops=flops, transcendentals=0, bytes_accessed=bytes_accessed),
    )(x_flat, w1_k, b1_k, w2_k, b2_k)

    # crop padded channels + lane padding + wrap columns; reshape is layout-only (NCHW ordered)
    return out_flat[:, :Cout, :M].reshape(N, Cout, H, W2)[:, :, :, :W]


def double_conv_ref(x, w1, b1, w2, b2):
    """Pure-JAX f32 reference (NCHW, same semantics as the PyTorch module)."""
    dn = ("NCHW", "OIHW", "NCHW")

    def conv(v, w, b):
        y = jax.lax.conv_general_dilated(
            v, w, window_strides=(1, 1), padding=[(1, 1), (1, 1)],
            dimension_numbers=dn)
        return y + b[None, :, None, None]

    return _leaky(conv(_leaky(conv(x, w1, b1)), w2, b2))


if __name__ == "__main__":
    # small shapes: batch=2, in_channel=4, out_channel=8, spatial=16
    N, Cin, Cout, H, W = 2, 4, 8, 16, 16

    key = jax.random.PRNGKey(0)
    kx, kw1, kb1, kw2, kb2 = jax.random.split(key, 5)

    x = jax.random.normal(kx, (N, Cin, H, W), dtype=jnp.float32)
    w1 = jax.random.normal(kw1, (Cout, Cin, K, K), dtype=jnp.float32) * 0.1
    b1 = jax.random.normal(kb1, (Cout,), dtype=jnp.float32) * 0.1
    w2 = jax.random.normal(kw2, (Cout, Cout, K, K), dtype=jnp.float32) * 0.1
    b2 = jax.random.normal(kb2, (Cout,), dtype=jnp.float32) * 0.1

    out = jax.block_until_ready(double_conv_pallas(x, w1, b1, w2, b2))
    ref = jax.block_until_ready(double_conv_ref(x, w1, b1, w2, b2))

    assert out.shape == (N, Cout, H, W), out.shape
    max_err = float(jnp.max(jnp.abs(out - ref)))
    # bf16 operands / bf16 intermediate with f32 accumulation -> loosened tolerance vs f32 ref
    assert jnp.allclose(out, ref, atol=5e-2, rtol=5e-2), max_err

    print("KERNEL_OK")
</pallas_src>

<mosaic_0001>
module attributes {stable_mosaic.version = 11 : i64} {
  func.func @_double_conv_kernel(%arg0: i32, %arg1: memref<2x16x512xbf16, #tpu.memory_space<vmem>>, %arg2: memref<16x144xbf16, #tpu.memory_space<vmem>>, %arg3: memref<16x1xf32, #tpu.memory_space<vmem>>, %arg4: memref<16x144xbf16, #tpu.memory_space<vmem>>, %arg5: memref<16x1xf32, #tpu.memory_space<vmem>>, %arg6: memref<2x16x384xf32, #tpu.memory_space<vmem>>, %arg7: memref<16x1280xbf16, #tpu.memory_space<vmem>>) attributes {dimension_semantics = [#tpu.dimension_semantics<parallel>], iteration_bounds = array<i64: 1>, scalar_prefetch = 0 : i64, scratch_operands = 1 : i64, tpu.core_type = #tpu.core_type<tc>, window_params = [{transform_indices = @transform_0, window_bounds = array<i64: 2, 16, 512>}, {pipeline_mode = #tpu.pipeline_mode<synchronous>, transform_indices = @transform_1, window_bounds = array<i64: 16, 144>}, {pipeline_mode = #tpu.pipeline_mode<synchronous>, transform_indices = @transform_2, window_bounds = array<i64: 16, 1>}, {pipeline_mode = #tpu.pipeline_mode<synchronous>, transform_indices = @transform_3, window_bounds = array<i64: 16, 144>}, {pipeline_mode = #tpu.pipeline_mode<synchronous>, transform_indices = @transform_4, window_bounds = array<i64: 16, 1>}, {transform_indices = @transform_5, window_bounds = array<i64: 2, 16, 384>}]} {
    %0 = tpu.iota {dimensions = array<i32: 1>} : vector<1x768xi32>
    %c384_i32 = arith.constant 384 : i32
    %c0_i32 = arith.constant 0 : i32
    %1 = arith.cmpi eq, %c384_i32, %c0_i32 : i32
    %c1_i32 = arith.constant 1 : i32
    %2 = arith.select %1, %c1_i32, %c384_i32 : i32
    %3 = vector.broadcast %2 : i32 to vector<1x768xi32>
    %4 = arith.remsi %0, %3 : vector<1x768xi32>
    %c0_i32_0 = arith.constant 0 : i32
    %5 = vector.broadcast %c0_i32_0 : i32 to vector<1x768xi32>
    %6 = arith.cmpi ne, %4, %5 : vector<1x768xi32>
    %c0_i32_1 = arith.constant 0 : i32
    %7 = vector.broadcast %c0_i32_1 : i32 to vector<1x768xi32>
    %8 = arith.cmpi slt, %4, %7 : vector<1x768xi32>
    %c0_i32_2 = arith.constant 0 : i32
    %9 = arith.cmpi slt, %2, %c0_i32_2 : i32
    %10 = vector.broadcast %9 : i1 to vector<1x768xi1>
    %11 = vector.broadcast %10 : vector<1x768xi1> to vector<1x768xi1>
    %12 = arith.xori %8, %11 : vector<1x768xi1>
    %13 = arith.andi %12, %6 : vector<1x768xi1>
    %14 = vector.broadcast %2 : i32 to vector<1x768xi32>
    %15 = arith.addi %4, %14 : vector<1x768xi32>
    %16 = arith.select %13, %15, %4 : vector<1x768xi1>, vector<1x768xi32>
    %c18_i32 = arith.constant 18 : i32
    %c0_i32_3 = arith.constant 0 : i32
    %17 = arith.cmpi eq, %c18_i32, %c0_i32_3 : i32
    %c1_i32_4 = arith.constant 1 : i32
    %18 = arith.select %17, %c1_i32_4, %c18_i32 : i32
    %19 = vector.broadcast %18 : i32 to vector<1x768xi32>
    %20 = arith.remsi %16, %19 : vector<1x768xi32>
    %c0_i32_5 = arith.constant 0 : i32
    %21 = vector.broadcast %c0_i32_5 : i32 to vector<1x768xi32>
    %22 = arith.cmpi ne, %20, %21 : vector<1x768xi32>
    %c0_i32_6 = arith.constant 0 : i32
    %23 = vector.broadcast %c0_i32_6 : i32 to vector<1x768xi32>
    %24 = arith.cmpi slt, %20, %23 : vector<1x768xi32>
    %c0_i32_7 = arith.constant 0 : i32
    %25 = arith.cmpi slt, %18, %c0_i32_7 : i32
    %26 = vector.broadcast %25 : i1 to vector<1x768xi1>
    %27 = vector.broadcast %26 : vector<1x768xi1> to vector<1x768xi1>
    %28 = arith.xori %24, %27 : vector<1x768xi1>
    %29 = arith.andi %28, %22 : vector<1x768xi1>
    %30 = vector.broadcast %18 : i32 to vector<1x768xi32>
    %31 = arith.addi %20, %30 : vector<1x768xi32>
    %32 = arith.select %29, %31, %20 : vector<1x768xi1>, vector<1x768xi32>
    %c16_i32 = arith.constant 16 : i32
    %33 = vector.broadcast %c16_i32 : i32 to vector<1x768xi32>
    %34 = arith.cmpi slt, %32, %33 : vector<1x768xi32>
    %c288_i32 = arith.constant 288 : i32
    %35 = vector.broadcast %c288_i32 : i32 to vector<1x768xi32>
    %36 = arith.cmpi slt, %16, %35 : vector<1x768xi32>
    %37 = arith.andi %34, %36 : vector<1x768xi1>
    %c0 = arith.constant 0 : index
    %c0_8 = arith.constant 0 : index
    %c0_9 = arith.constant 0 : index
    %38 = vector.load %arg1[%c0, %c0_8, %c0_9] : memref<2x16x512xbf16, #tpu.memory_space<vmem>>, vector<1x16x384xbf16>
    %39 = vector.shape_cast %38 : vector<1x16x384xbf16> to vector<16x384xbf16>
    %c1 = arith.constant 1 : index
    %c0_10 = arith.constant 0 : index
    %c0_11 = arith.constant 0 : index
    %40 = vector.load %arg1[%c1, %c0_10, %c0_11] : memref<2x16x512xbf16, #tpu.memory_space<vmem>>, vector<1x16x384xbf16>
    %41 = vector.shape_cast %40 : vector<1x16x384xbf16> to vector<16x384xbf16>
    %42 = tpu.concatenate %39, %41 in 1 : vector<16x384xbf16>, vector<16x384xbf16> -> vector<16x768xbf16>
    %c0_12 = arith.constant 0 : index
    %c0_13 = arith.constant 0 : index
    %c1_14 = arith.constant 1 : index
    %43 = vector.load %arg1[%c0_12, %c0_13, %c1_14] : memref<2x16x512xbf16, #tpu.memory_space<vmem>>, vector<1x16x384xbf16>
    %44 = vector.shape_cast %43 : vector<1x16x384xbf16> to vector<16x384xbf16>
    %c1_15 = arith.constant 1 : index
    %c0_16 = arith.constant 0 : index
    %c1_17 = arith.constant 1 : index
    %45 = vector.load %arg1[%c1_15, %c0_16, %c1_17] : memref<2x16x512xbf16, #tpu.memory_space<vmem>>, vector<1x16x384xbf16>
    %46 = vector.shape_cast %45 : vector<1x16x384xbf16> to vector<16x384xbf16>
    %47 = tpu.concatenate %44, %46 in 1 : vector<16x384xbf16>, vector<16x384xbf16> -> vector<16x768xbf16>
    %c0_18 = arith.constant 0 : index
    %c0_19 = arith.constant 0 : index
    %c2 = arith.constant 2 : index
    %48 = vector.load %arg1[%c0_18, %c0_19, %c2] : memref<2x16x512xbf16, #tpu.memory_space<vmem>>, vector<1x16x384xbf16>
    %49 = vector.shape_cast %48 : vector<1x16x384xbf16> to vector<16x384xbf16>
    %c1_20 = arith.constant 1 : index
    %c0_21 = arith.constant 0 : index
    %c2_22 = arith.constant 2 : index
    %50 = vector.load %arg1[%c1_20, %c0_21, %c2_22] : memref<2x16x512xbf16, #tpu.memory_space<vmem>>, vector<1x16x384xbf16>
    %51 = vector.shape_cast %50 : vector<1x16x384xbf16> to vector<16x384xbf16>
    %52 = tpu.concatenate %49, %51 in 1 : vector<16x384xbf16>, vector<16x384xbf16> -> vector<16x768xbf16>
    %c0_23 = arith.constant 0 : index
    %c0_24 = arith.constant 0 : index
    %c18 = arith.constant 18 : index
    %53 = vector.load %arg1[%c0_23, %c0_24, %c18] : memref<2x16x512xbf16, #tpu.memory_space<vmem>>, vector<1x16x384xbf16>
    %54 = vector.shape_cast %53 : vector<1x16x384xbf16> to vector<16x384xbf16>
    %c1_25 = arith.constant 1 : index
    %c0_26 = arith.constant 0 : index
    %c18_27 = arith.constant 18 : index
    %55 = vector.load %arg1[%c1_25, %c0_26, %c18_27] : memref<2x16x512xbf16, #tpu.memory_space<vmem>>, vector<1x16x384xbf16>
    %56 = vector.shape_cast %55 : vector<1x16x384xbf16> to vector<16x384xbf16>
    %57 = tpu.concatenate %54, %56 in 1 : vector<16x384xbf16>, vector<16x384xbf16> -> vector<16x768xbf16>
    %c0_28 = arith.constant 0 : index
    %c0_29 = arith.constant 0 : index
    %c19 = arith.constant 19 : index
    %58 = vector.load %arg1[%c0_28, %c0_29, %c19] : memref<2x16x512xbf16, #tpu.memory_space<vmem>>, vector<1x16x384xbf16>
    %59 = vector.shape_cast %58 : vector<1x16x384xbf16> to vector<16x384xbf16>
    %c1_30 = arith.constant 1 : index
    %c0_31 = arith.constant 0 : index
    %c19_32 = arith.constant 19 : index
    %60 = vector.load %arg1[%c1_30, %c0_31, %c19_32] : memref<2x16x512xbf16, #tpu.memory_space<vmem>>, vector<1x16x384xbf16>
    %61 = vector.shape_cast %60 : vector<1x16x384xbf16> to vector<16x384xbf16>
    %62 = tpu.concatenate %59, %61 in 1 : vector<16x384xbf16>, vector<16x384xbf16> -> vector<16x768xbf16>
    %c0_33 = arith.constant 0 : index
    %c0_34 = arith.constant 0 : index
    %c20 = arith.constant 20 : index
    %63 = vector.load %arg1[%c0_33, %c0_34, %c20] : memref<2x16x512xbf16, #tpu.memory_space<vmem>>, vector<1x16x384xbf16>
    %64 = vector.shape_cast %63 : vector<1x16x384xbf16> to vector<16x384xbf16>
    %c1_35 = arith.constant 1 : index
    %c0_36 = arith.constant 0 : index
    %c20_37 = arith.constant 20 : index
    %65 = vector.load %arg1[%c1_35, %c0_36, %c20_37] : memref<2x16x512xbf16, #tpu.memory_space<vmem>>, vector<1x16x384xbf16>
    %66 = vector.shape_cast %65 : vector<1x16x384xbf16> to vector<16x384xbf16>
    %67 = tpu.concatenate %64, %66 in 1 : vector<16x384xbf16>, vector<16x384xbf16> -> vector<16x768xbf16>
    %c0_38 = arith.constant 0 : index
    %c0_39 = arith.constant 0 : index
    %c36 = arith.constant 36 : index
    %68 = vector.load %arg1[%c0_38, %c0_39, %c36] : memref<2x16x512xbf16, #tpu.memory_space<vmem>>, vector<1x16x384xbf16>
    %69 = vector.shape_cast %68 : vector<1x16x384xbf16> to vector<16x384xbf16>
    %c1_40 = arith.constant 1 : index
    %c0_41 = arith.constant 0 : index
    %c36_42 = arith.constant 36 : index
    %70 = vector.load %arg1[%c1_40, %c0_41, %c36_42] : memref<2x16x512xbf16, #tpu.memory_space<vmem>>, vector<1x16x384xbf16>
    %71 = vector.shape_cast %70 : vector<1x16x384xbf16> to vector<16x384xbf16>
    %72 = tpu.concatenate %69, %71 in 1 : vector<16x384xbf16>, vector<16x384xbf16> -> vector<16x768xbf16>
    %c0_43 = arith.constant 0 : index
    %c0_44 = arith.constant 0 : index
    %c37 = arith.constant 37 : index
    %73 = vector.load %arg1[%c0_43, %c0_44, %c37] : memref<2x16x512xbf16, #tpu.memory_space<vmem>>, vector<1x16x384xbf16>
    %74 = vector.shape_cast %73 : vector<1x16x384xbf16> to vector<16x384xbf16>
    %c1_45 = arith.constant 1 : index
    %c0_46 = arith.constant 0 : index
    %c37_47 = arith.constant 37 : index
    %75 = vector.load %arg1[%c1_45, %c0_46, %c37_47] : memref<2x16x512xbf16, #tpu.memory_space<vmem>>, vector<1x16x384xbf16>
    %76 = vector.shape_cast %75 : vector<1x16x384xbf16> to vector<16x384xbf16>
    %77 = tpu.concatenate %74, %76 in 1 : vector<16x384xbf16>, vector<16x384xbf16> -> vector<16x768xbf16>
    %c0_48 = arith.constant 0 : index
    %c0_49 = arith.constant 0 : index
    %c38 = arith.constant 38 : index
    %78 = vector.load %arg1[%c0_48, %c0_49, %c38] : memref<2x16x512xbf16, #tpu.memory_space<vmem>>, vector<1x16x384xbf16>
    %79 = vector.shape_cast %78 : vector<1x16x384xbf16> to vector<16x384xbf16>
    %c1_50 = arith.constant 1 : index
    %c0_51 = arith.constant 0 : index
    %c38_52 = arith.constant 38 : index
    %80 = vector.load %arg1[%c1_50, %c0_51, %c38_52] : memref<2x16x512xbf16, #tpu.memory_space<vmem>>, vector<1x16x384xbf16>
    %81 = vector.shape_cast %80 : vector<1x16x384xbf16> to vector<16x384xbf16>
    %82 = tpu.concatenate %79, %81 in 1 : vector<16x384xbf16>, vector<16x384xbf16> -> vector<16x768xbf16>
    %83 = tpu.concatenate %42, %47, %52, %57, %62, %67, %72, %77, %82 in 0 : vector<16x768xbf16>, vector<16x768xbf16>, vector<16x768xbf16>, vector<16x768xbf16>, vector<16x768xbf16>, vector<16x768xbf16>, vector<16x768xbf16>, vector<16x768xbf16>, vector<16x768xbf16> -> vector<144x768xbf16>
    %c0_53 = arith.constant 0 : index
    %c0_54 = arith.constant 0 : index
    %84 = vector.load %arg2[%c0_53, %c0_54] : memref<16x144xbf16, #tpu.memory_space<vmem>>, vector<16x144xbf16>
    %cst = arith.constant dense<0.000000e+00> : vector<16x768xf32>
    %85 = tpu.matmul %84, %83, %cst {dimension_numbers = #tpu.dot_dimension_numbers<[1], [0], [0], [1], [0, 0, 1, 1], [], []>} : vector<16x144xbf16>, vector<144x768xbf16>, vector<16x768xf32> -> vector<16x768xf32>
    %c0_55 = arith.constant 0 : index
    %c0_56 = arith.constant 0 : index
    %86 = vector.load %arg3[%c0_55, %c0_56] : memref<16x1xf32, #tpu.memory_space<vmem>>, vector<16x1xf32>
    %87 = vector.broadcast %86 : vector<16x1xf32> to vector<16x768xf32>
    %88 = arith.addf %85, %87 : vector<16x768xf32>
    %cst_57 = arith.constant 0.000000e+00 : f32
    %89 = vector.broadcast %cst_57 : f32 to vector<16x768xf32>
    %90 = arith.cmpf oge, %88, %89 : vector<16x768xf32>
    %cst_58 = arith.constant 2.000000e-01 : f32
    %91 = vector.broadcast %cst_58 : f32 to vector<16x768xf32>
    %92 = arith.mulf %91, %88 : vector<16x768xf32>
    %93 = arith.select %90, %88, %92 : vector<16x768xi1>, vector<16x768xf32>
    %cst_59 = arith.constant 0.000000e+00 : f32
    %94 = vector.shape_cast %37 : vector<1x768xi1> to vector<1x768xi1>
    %95 = vector.broadcast %94 : vector<1x768xi1> to vector<16x768xi1>
    %96 = vector.broadcast %cst_59 : f32 to vector<16x768xf32>
    %97 = arith.select %95, %93, %96 : vector<16x768xi1>, vector<16x768xf32>
    %98 = arith.truncf %97 : vector<16x768xf32> to vector<16x768xbf16>
    %cst_60 = arith.constant 0.000000e+00 : bf16
    %99 = vector.broadcast %cst_60 : bf16 to vector<16x128xbf16>
    %c0_61 = arith.constant 0 : index
    %c0_62 = arith.constant 0 : index
    %100 = vector.load %arg7[%c0_61, %c0_62] : memref<16x1280xbf16, #tpu.memory_space<vmem>>, vector<16x128xbf16>
    tpu.vector_store %arg7[%c0_61, %c0_62], %99 {strides = array<i32>} : memref<16x1280xbf16, #tpu.memory_space<vmem>>, vector<16x128xbf16>,
    %c0_63 = arith.constant 0 : index
    %c512 = arith.constant 512 : index
    %101 = vector.load %arg7[%c0_63, %c512] : memref<16x1280xbf16, #tpu.memory_space<vmem>>, vector<16x128xbf16>
    tpu.vector_store %arg7[%c0_63, %c512], %99 {strides = array<i32>} : memref<16x1280xbf16, #tpu.memory_space<vmem>>, vector<16x128xbf16>,
    %102 = vector.extract_strided_slice %98 {offsets = [0, 0], sizes = [16, 384], strides = [1, 1]} : vector<16x768xbf16> to vector<16x384xbf16>
    %c0_64 = arith.constant 0 : index
    %c128 = arith.constant 128 : index
    %103 = vector.load %arg7[%c0_64, %c128] : memref<16x1280xbf16, #tpu.memory_space<vmem>>, vector<16x384xbf16>
    tpu.vector_store %arg7[%c0_64, %c128], %102 {strides = array<i32>} : memref<16x1280xbf16, #tpu.memory_space<vmem>>, vector<16x384xbf16>,
    %c0_65 = arith.constant 0 : index
    %c640 = arith.constant 640 : index
    %104 = vector.load %arg7[%c0_65, %c640] : memref<16x1280xbf16, #tpu.memory_space<vmem>>, vector<16x128xbf16>
    tpu.vector_store %arg7[%c0_65, %c640], %99 {strides = array<i32>} : memref<16x1280xbf16, #tpu.memory_space<vmem>>, vector<16x128xbf16>,
    %c0_66 = arith.constant 0 : index
    %c1152 = arith.constant 1152 : index
    %105 = vector.load %arg7[%c0_66, %c1152] : memref<16x1280xbf16, #tpu.memory_space<vmem>>, vector<16x128xbf16>
    tpu.vector_store %arg7[%c0_66, %c1152], %99 {strides = array<i32>} : memref<16x1280xbf16, #tpu.memory_space<vmem>>, vector<16x128xbf16>,
    %106 = vector.extract_strided_slice %98 {offsets = [0, 384], sizes = [16, 384], strides = [1, 1]} : vector<16x768xbf16> to vector<16x384xbf16>
    %c0_67 = arith.constant 0 : index
    %c768 = arith.constant 768 : index
    %107 = vector.load %arg7[%c0_67, %c768] : memref<16x1280xbf16, #tpu.memory_space<vmem>>, vector<16x384xbf16>
    tpu.vector_store %arg7[%c0_67, %c768], %106 {strides = array<i32>} : memref<16x1280xbf16, #tpu.memory_space<vmem>>, vector<16x384xbf16>,
    %c0_68 = arith.constant 0 : index
    %c109 = arith.constant 109 : index
    %108 = vector.load %arg7[%c0_68, %c109] : memref<16x1280xbf16, #tpu.memory_space<vmem>>, vector<16x384xbf16>
    %c0_69 = arith.constant 0 : index
    %c749 = arith.constant 749 : index
    %109 = vector.load %arg7[%c0_69, %c749] : memref<16x1280xbf16, #tpu.memory_space<vmem>>, vector<16x384xbf16>
    %110 = tpu.concatenate %108, %109 in 1 : vector<16x384xbf16>, vector<16x384xbf16> -> vector<16x768xbf16>
    %c0_70 = arith.constant 0 : index
    %c110 = arith.constant 110 : index
    %111 = vector.load %arg7[%c0_70, %c110] : memref<16x1280xbf16, #tpu.memory_space<vmem>>, vector<16x384xbf16>
    %c0_71 = arith.constant 0 : index
    %c750 = arith.constant 750 : index
    %112 = vector.load %arg7[%c0_71, %c750] : memref<16x1280xbf16, #tpu.memory_space<vmem>>, vector<16x384xbf16>
    %113 = tpu.concatenate %111, %112 in 1 : vector<16x384xbf16>, vector<16x384xbf16> -> vector<16x768xbf16>
    %c0_72 = arith.constant 0 : index
    %c111 = arith.constant 111 : index
    %114 = vector.load %arg7[%c0_72, %c111] : memref<16x1280xbf16, #tpu.memory_space<vmem>>, vector<16x384xbf16>
    %c0_73 = arith.constant 0 : index
    %c751 = arith.constant 751 : index
    %115 = vector.load %arg7[%c0_73, %c751] : memref<16x1280xbf16, #tpu.memory_space<vmem>>, vector<16x384xbf16>
    %116 = tpu.concatenate %114, %115 in 1 : vector<16x384xbf16>, vector<16x384xbf16> -> vector<16x768xbf16>
    %c0_74 = arith.constant 0 : index
    %c127 = arith.constant 127 : index
    %117 = vector.load %arg7[%c0_74, %c127] : memref<16x1280xbf16, #tpu.memory_space<vmem>>, vector<16x384xbf16>
    %c0_75 = arith.constant 0 : index
    %c767 = arith.constant 767 : index
    %118 = vector.load %arg7[%c0_75, %c767] : memref<16x1280xbf16, #tpu.memory_space<vmem>>, vector<16x384xbf16>
    %119 = tpu.concatenate %117, %118 in 1 : vector<16x384xbf16>, vector<16x384xbf16> -> vector<16x768xbf16>
    %c0_76 = arith.constant 0 : index
    %c128_77 = arith.constant 128 : index
    %120 = vector.load %arg7[%c0_76, %c128_77] : memref<16x1280xbf16, #tpu.memory_space<vmem>>, vector<16x384xbf16>
    %c0_78 = arith.constant 0 : index
    %c768_79 = arith.constant 768 : index
    %121 = vector.load %arg7[%c0_78, %c768_79] : memref<16x1280xbf16, #tpu.memory_space<vmem>>, vector<16x384xbf16>
    %122 = tpu.concatenate %120, %121 in 1 : vector<16x384xbf16>, vector<16x384xbf16> -> vector<16x768xbf16>
    %c0_80 = arith.constant 0 : index
    %c129 = arith.constant 129 : index
    %123 = vector.load %arg7[%c0_80, %c129] : memref<16x1280xbf16, #tpu.memory_space<vmem>>, vector<16x384xbf16>
    %c0_81 = arith.constant 0 : index
    %c769 = arith.constant 769 : index
    %124 = vector.load %arg7[%c0_81, %c769] : memref<16x1280xbf16, #tpu.memory_space<vmem>>, vector<16x384xbf16>
    %125 = tpu.concatenate %123, %124 in 1 : vector<16x384xbf16>, vector<16x384xbf16> -> vector<16x768xbf16>
    %c0_82 = arith.constant 0 : index
    %c145 = arith.constant 145 : index
    %126 = vector.load %arg7[%c0_82, %c145] : memref<16x1280xbf16, #tpu.memory_space<vmem>>, vector<16x384xbf16>
    %c0_83 = arith.constant 0 : index
    %c785 = arith.constant 785 : index
    %127 = vector.load %arg7[%c0_83, %c785] : memref<16x1280xbf16, #tpu.memory_space<vmem>>, vector<16x384xbf16>
    %128 = tpu.concatenate %126, %127 in 1 : vector<16x384xbf16>, vector<16x384xbf16> -> vector<16x768xbf16>
    %c0_84 = arith.constant 0 : index
    %c146 = arith.constant 146 : index
    %129 = vector.load %arg7[%c0_84, %c146] : memref<16x1280xbf16, #tpu.memory_space<vmem>>, vector<16x384xbf16>
    %c0_85 = arith.constant 0 : index
    %c786 = arith.constant 786 : index
    %130 = vector.load %arg7[%c0_85, %c786] : memref<16x1280xbf16, #tpu.memory_space<vmem>>, vector<16x384xbf16>
    %131 = tpu.concatenate %129, %130 in 1 : vector<16x384xbf16>, vector<16x384xbf16> -> vector<16x768xbf16>
    %c0_86 = arith.constant 0 : index
    %c147 = arith.constant 147 : index
    %132 = vector.load %arg7[%c0_86, %c147] : memref<16x1280xbf16, #tpu.memory_space<vmem>>, vector<16x384xbf16>
    %c0_87 = arith.constant 0 : index
    %c787 = arith.constant 787 : index
    %133 = vector.load %arg7[%c0_87, %c787] : memref<16x1280xbf16, #tpu.memory_space<vmem>>, vector<16x384xbf16>
    %134 = tpu.concatenate %132, %133 in 1 : vector<16x384xbf16>, vector<16x384xbf16> -> vector<16x768xbf16>
    %135 = tpu.concatenate %110, %113, %116, %119, %122, %125, %128, %131, %134 in 0 : vector<16x768xbf16>, vector<16x768xbf16>, vector<16x768xbf16>, vector<16x768xbf16>, vector<16x768xbf16>, vector<16x768xbf16>, vector<16x768xbf16>, vector<16x768xbf16>, vector<16x768xbf16> -> vector<144x768xbf16>
    %c0_88 = arith.constant 0 : index
    %c0_89 = arith.constant 0 : index
    %136 = vector.load %arg4[%c0_88, %c0_89] : memref<16x144xbf16, #tpu.memory_space<vmem>>, vector<16x144xbf16>
    %cst_90 = arith.constant dense<0.000000e+00> : vector<16x768xf32>
    %137 = tpu.matmul %136, %135, %cst_90 {dimension_numbers = #tpu.dot_dimension_numbers<[1], [0], [0], [1], [0, 0, 1, 1], [], []>} : vector<16x144xbf16>, vector<144x768xbf16>, vector<16x768xf32> -> vector<16x768xf32>
    %c0_91 = arith.constant 0 : index
    %c0_92 = arith.constant 0 : index
    %138 = vector.load %arg5[%c0_91, %c0_92] : memref<16x1xf32, #tpu.memory_space<vmem>>, vector<16x1xf32>
    %139 = vector.broadcast %138 : vector<16x1xf32> to vector<16x768xf32>
    %140 = arith.addf %137, %139 : vector<16x768xf32>
    %cst_93 = arith.constant 0.000000e+00 : f32
    %141 = vector.broadcast %cst_93 : f32 to vector<16x768xf32>
    %142 = arith.cmpf oge, %140, %141 : vector<16x768xf32>
    %cst_94 = arith.constant 2.000000e-01 : f32
    %143 = vector.broadcast %cst_94 : f32 to vector<16x768xf32>
    %144 = arith.mulf %143, %140 : vector<16x768xf32>
    %145 = arith.select %142, %140, %144 : vector<16x768xi1>, vector<16x768xf32>
    %cst_95 = arith.constant 0.000000e+00 : f32
    %146 = vector.shape_cast %37 : vector<1x768xi1> to vector<1x768xi1>
    %147 = vector.broadcast %146 : vector<1x768xi1> to vector<16x768xi1>
    %148 = vector.broadcast %cst_95 : f32 to vector<16x768xf32>
    %149 = arith.select %147, %145, %148 : vector<16x768xi1>, vector<16x768xf32>
    %150 = vector.extract_strided_slice %149 {offsets = [0, 0], sizes = [16, 384], strides = [1, 1]} : vector<16x768xf32> to vector<16x384xf32>
    %c0_96 = arith.constant 0 : index
    %c0_97 = arith.constant 0 : index
    %c0_98 = arith.constant 0 : index
    %151 = vector.load %arg6[%c0_96, %c0_97, %c0_98] : memref<2x16x384xf32, #tpu.memory_space<vmem>>, vector<1x16x384xf32>
    %152 = vector.shape_cast %151 : vector<1x16x384xf32> to vector<16x384xf32>
    %153 = vector.shape_cast %150 : vector<16x384xf32> to vector<1x16x384xf32>
    tpu.vector_store %arg6[%c0_96, %c0_97, %c0_98], %153 {strides = array<i32>} : memref<2x16x384xf32, #tpu.memory_space<vmem>>, vector<1x16x384xf32>,
    %154 = vector.extract_strided_slice %149 {offsets = [0, 384], sizes = [16, 384], strides = [1, 1]} : vector<16x768xf32> to vector<16x384xf32>
    %c1_99 = arith.constant 1 : index
    %c0_100 = arith.constant 0 : index
    %c0_101 = arith.constant 0 : index
    %155 = vector.load %arg6[%c1_99, %c0_100, %c0_101] : memref<2x16x384xf32, #tpu.memory_space<vmem>>, vector<1x16x384xf32>
    %156 = vector.shape_cast %155 : vector<1x16x384xf32> to vector<16x384xf32>
    %157 = vector.shape_cast %154 : vector<16x384xf32> to vector<1x16x384xf32>
    tpu.vector_store %arg6[%c1_99, %c0_100, %c0_101], %157 {strides = array<i32>} : memref<2x16x384xf32, #tpu.memory_space<vmem>>, vector<1x16x384xf32>,
    return
  }
  func.func @transform_0(%arg0: i32) -> (i32, i32, i32) {
    %c0_i32 = arith.constant 0 : i32
    %c0_i32_0 = arith.constant 0 : i32
    %c0_i32_1 = arith.constant 0 : i32
    return %arg0, %c0_i32, %c0_i32_0 : i32, i32, i32
  }
  func.func @transform_1(%arg0: i32) -> (i32, i32) {
    %c0_i32 = arith.constant 0 : i32
    %c0_i32_0 = arith.constant 0 : i32
    %c0_i32_1 = arith.constant 0 : i32
    return %c0_i32, %c0_i32_0 : i32, i32
  }
  func.func @transform_2(%arg0: i32) -> (i32, i32) {
    %c0_i32 = arith.constant 0 : i32
    %c0_i32_0 = arith.constant 0 : i32
    %c0_i32_1 = arith.constant 0 : i32
    return %c0_i32, %c0_i32_0 : i32, i32
  }
  func.func @transform_3(%arg0: i32) -> (i32, i32) {
    %c0_i32 = arith.constant 0 : i32
    %c0_i32_0 = arith.constant 0 : i32
    %c0_i32_1 = arith.constant 0 : i32
    return %c0_i32, %c0_i32_0 : i32, i32
  }
  func.func @transform_4(%arg0: i32) -> (i32, i32) {
    %c0_i32 = arith.constant 0 : i32
    %c0_i32_0 = arith.constant 0 : i32
    %c0_i32_1 = arith.constant 0 : i32
    return %c0_i32, %c0_i32_0 : i32, i32
  }
  func.func @transform_5(%arg0: i32) -> (i32, i32, i32) {
    %c0_i32 = arith.constant 0 : i32
    %c0_i32_0 = arith.constant 0 : i32
    %c0_i32_1 = arith.constant 0 : i32
    return %arg0, %c0_i32, %c0_i32_0 : i32, i32, i32
  }
}

</mosaic_0001>

<bundles_post_ra>
// kernel: tpu_custom_call.1
= control target key start
LH: loop header
LB: loop body
LE: loop exit
PB: predicated region body
PF: predicated region fallthrough
CT: control target
= control target key end

     0   :  { %10 = vsyncpa [#allocation4], 0  ;;  %s2269_s0 = inlined_call_operand.hbm [shape: bf16[2,16,512], index: 0, kind: input, shape index: {}]   ;;  %s2270_s1 = inlined_call_operand.vmem [shape: bf16[16,144], index: 1, kind: input, shape index: {}]   ;;  %s2271_s2 = inlined_call_operand.vmem [shape: f32[16,1], index: 2, kind: input, shape index: {}]   ;;  %s2272_s3 = inlined_call_operand.vmem [shape: bf16[16,144], index: 3, kind: input, shape index: {}]   ;;  %s2273_s4 = inlined_call_operand.vmem [shape: f32[16,1], index: 4, kind: input, shape index: {}]   ;;  %s2274_s5 = inlined_call_operand.hbm [shape: f32[2,16,384], index: 5, kind: output, shape index: {}]  }
   0x1   :  { %11 = vsyncpa [#allocation5], 0  ;;  %s1454_s18 = smov [#allocation3]   ;;  %s1406_s22 = scalar_lea.hbm %s2269_s0, 1024 }
   0x2   :  { %s17_s19 = sshll.u32 %s1454_s18, 4  ;;  %p1407_p0 = scmp.ne.s32.totalorder %s2269_s0, %s1406_s22  ;;  %s18_s19 = int_to_ptr.vmem [resolvable:$true] %s17_s19 }
   0x3   :  { %p1410_p1 = scmp.lt.u32.totalorder %s1406_s22, %s2269_s0 }
   0x5   :  { %p1412_p2 = pnand %p1410_p1, %p1407_p0 }
   0x7   :  { %1415 = shalt.err (!%p1412_p2)
}
   0x8   :  { %s1416_s27 = scalar_lea.vmem %s18_s19, 1024  ;;  %p1421_p4 = scmp.lt.s32.totalorder %s18_s19, %s18_s19 }
   0x9   :  { %p1417_p3 = scmp.ne.s32.totalorder %s18_s19, %s1416_s27  ;;  %p1422_p5 = scmp.lt.s32.totalorder %s1416_s27, %s1416_s27 }
   0xb   :  { %p1423_p6 = por %p1422_p5, %p1421_p4 }
   0xd   :  { %p1424_p7 = pnand %p1423_p6, %p1417_p3 }
   0xf   :  { %1427 = shalt.err (!%p1424_p7)
}
  0x10   :  { %s1455_s28 = smov 256   ;;  %s1456_s29 = smov 16  }
  0x11   :  { %23 = dma.hbm_to_vmem [thread:$0]  %s2269_s0, 1024, %s18_s19, [#allocation4], %s1455_s28, %s1455_s28, %s1456_s29  }
  0x12   :  { %1450 = dma.done.wait [#allocation4], 1024  }
  0x13   :  { %1451 = vsyncadd [#allocation4], 4294966272  ;;  %v1386_v0 = vld [vmem:[#allocation3 + $0x4] ss:$16 sps:$4 sm:$0xff]   ;;  %v1388_v1 = vld [vmem:[#allocation3] ss:$16 sps:$4 sm:$0xff]  }
  0x14   :  { %s1457_s7 = smov 127   ;;  %v1389_v2 = vld [vmem:[#allocation3 + $0x8] ss:$16 sps:$4 sm:$0xff]   ;;  %573 = vmatprep.subr.bf16.mxu0 %v1386_v0  ;;  %v1518_v3 = vld [vmem:[#allocation3 + $0x20] ss:$16 sps:$4 sm:$0xff]   ;;  %s1458_s8 = smov 126  }
  0x15   :  { %308 = vrot.lane.b32.xlu0 %v1386_v0, %s1457_s7  ;;  %306 = vrot.lane.b32.xlu1 %v1388_v1, %s1457_s7  ;;  %s1459_s0 = smov 110   ;;  %s1460_s9 = smov 109   ;;  %v1398_v4 = vld [vmem:[#allocation3 + $0x8] ss:$16 sps:$4 sm:$0xff]   ;;  %v1536_v5 = vld [vmem:[#allocation3 + $0x24] ss:$16 sps:$4 sm:$0xff]  }
  0x16   :  { %574 = vmatpush1.bf16.msra.mxu0 %v1388_v1  ;;  %616 = vmatprep.subr.bf16.mxu1 %v1518_v3  ;;  %s1461_s10 = smov 108   ;;  %s1462_s11 = smov 92   ;;  %v1394_v6 = vld [vmem:[#allocation3 + $0xc] ss:$16 sps:$4 sm:$0xff]   ;;  %vm569_vm0 = vcmask 130048   ;;  %vm314_vm1 = vcmask 1039360  }
  0x17   :  { %617 = vmatpush1.bf16.msra.mxu1 %v1398_v4  ;;  %s1463_s12 = smov 91   ;;  %s1464_s13 = smov 90   ;;  %v1556_v7 = vld [vmem:[%s2270_s1 + $0x4] ss:$8 sps:$4 sm:$0xff]   ;;  %v1395_v8 = vld [vmem:[#allocation3 + $0x28] ss:$16 sps:$4 sm:$0xff]  }
  0x18   :  { %1284 = vmatprep.mubr.msk.bf16.mxu0 %vm569_vm0, %v1556_v7  ;;  %1285 = vmatprep.mubr.msk.bf16.mxu1 %vm569_vm0, %v1556_v7  ;;  %v1397_v9 = vld [vmem:[#allocation3 + $0x2c] ss:$16 sps:$4 sm:$0xff]   ;;  %v1465_v13 = vmov 0   ;;  %vm351_vm2 = vcmask 1031168   ;;  %vm2276_vm3 = vcmask 900096   ;;  %v548_v21 = vld [vmem:[%s2271_s2] sm:$0xff] }
  0x19   :  { %310 = vrot.lane.b32.xlu0 %v1389_v2, %s1457_s7  ;;  %345 = vrot.lane.b32.xlu1 %v1386_v0, %s1458_s8  ;;  %v549_v23 = vld [vmem:[%s2271_s2 + $0x8] sm:$0xff]  ;;  %vm2275_vm4 = vcmask 891904   ;;  %s1466_s20 = smov 18   ;;  %s1467_s21 = smov 19   ;;  %vm438_vm5 = vcmask 883712   ;;  %vm467_vm6 = vcmask 752640  }
  0x1a   :  { %1355 = vset.pattern.permute.xlu1 %v1465_v13  ;;  %1354 = vset.pattern.permute.xlu0 %v1465_v13  ;;  %vm496_vm7 = vcmask 744448   ;;  %vm525_vm8 = vcmask 736256   ;;  %v1401_v63 = vld [vmem:[#allocation3 + $0x28] ss:$16 sps:$4 sm:$0xff]   ;;  %s1469_s23 = smov 17   ;;  %s1470_s24 = smov 111  }
  0x1d   :  { %347 = vrot.lane.b32.xlu0 %v1389_v2, %s1458_s8  ;;  %343 = vrot.lane.b32.xlu1 %v1388_v1, %s1458_s8 }
  0x21   :  { %374 = vrot.lane.b32.xlu0 %v1386_v0, %s1459_s0  ;;  %376 = vrot.lane.b32.xlu1 %v1389_v2, %s1459_s0 }
  0x25   :  { %372 = vrot.lane.b32.xlu0 %v1388_v1, %s1459_s0  ;;  %403 = vrot.lane.b32.xlu1 %v1386_v0, %s1460_s9 }
  0x29   :  { %405 = vrot.lane.b32.xlu0 %v1389_v2, %s1460_s9  ;;  %401 = vrot.lane.b32.xlu1 %v1388_v1, %s1460_s9 }
  0x2d   :  { %432 = vrot.lane.b32.xlu0 %v1386_v0, %s1461_s10  ;;  %434 = vrot.lane.b32.xlu1 %v1389_v2, %s1461_s10 }
  0x31   :  { %430 = vrot.lane.b32.xlu0 %v1388_v1, %s1461_s10  ;;  %461 = vrot.lane.b32.xlu1 %v1386_v0, %s1462_s11 }
  0x35   :  { %463 = vrot.lane.b32.xlu0 %v1389_v2, %s1462_s11  ;;  %329 = vrot.lane.b32.xlu1 %v1518_v3, %s1457_s7 }
  0x39   :  { %331 = vrot.lane.b32.xlu0 %v1536_v5, %s1457_s7  ;;  %459 = vrot.lane.b32.xlu1 %v1388_v1, %s1462_s11 }
  0x3d   :  { %312 = vrot.lane.b32.xlu0 %v1394_v6, %s1457_s7  ;;  %490 = vrot.lane.b32.xlu1 %v1386_v0, %s1463_s12 }
  0x41   :  { %492 = vrot.lane.b32.xlu0 %v1389_v2, %s1463_s12  ;;  %358 = vrot.lane.b32.xlu1 %v1518_v3, %s1458_s8 }
  0x45   :  { %360 = vrot.lane.b32.xlu0 %v1536_v5, %s1458_s8  ;;  %488 = vrot.lane.b32.xlu1 %v1388_v1, %s1463_s12 }
  0x49   :  { %349 = vrot.lane.b32.xlu0 %v1394_v6, %s1458_s8  ;;  %519 = vrot.lane.b32.xlu1 %v1386_v0, %s1464_s13 }
  0x4d   :  { %521 = vrot.lane.b32.xlu0 %v1389_v2, %s1464_s13  ;;  %387 = vrot.lane.b32.xlu1 %v1518_v3, %s1459_s0 }
  0x51   :  { %389 = vrot.lane.b32.xlu0 %v1536_v5, %s1459_s0  ;;  %517 = vrot.lane.b32.xlu1 %v1388_v1, %s1464_s13 }
  0x55   :  { %378 = vrot.lane.b32.xlu0 %v1394_v6, %s1459_s0  ;;  %416 = vrot.lane.b32.xlu1 %v1518_v3, %s1460_s9 }
  0x59   :  { %418 = vrot.lane.b32.xlu0 %v1536_v5, %s1460_s9  ;;  %407 = vrot.lane.b32.xlu1 %v1394_v6, %s1460_s9 }
  0x5d   :  { %333 = vrot.lane.b32.xlu0 %v1395_v8, %s1457_s7  ;;  %335 = vrot.lane.b32.xlu1 %v1397_v9, %s1457_s7 }
  0x61   :  { %445 = vrot.lane.b32.xlu0 %v1518_v3, %s1461_s10  ;;  %447 = vrot.lane.b32.xlu1 %v1536_v5, %s1461_s10 }
  0x65   :  { %436 = vrot.lane.b32.xlu0 %v1394_v6, %s1461_s10  ;;  %362 = vrot.lane.b32.xlu1 %v1395_v8, %s1458_s8 }
  0x69   :  { %364 = vrot.lane.b32.xlu0 %v1397_v9, %s1458_s8  ;;  %474 = vrot.lane.b32.xlu1 %v1518_v3, %s1462_s11 }
  0x6d   :  { %476 = vrot.lane.b32.xlu0 %v1536_v5, %s1462_s11  ;;  %465 = vrot.lane.b32.xlu1 %v1394_v6, %s1462_s11 }
  0x71   :  { %391 = vrot.lane.b32.xlu0 %v1395_v8, %s1459_s0  ;;  %393 = vrot.lane.b32.xlu1 %v1397_v9, %s1459_s0 }
  0x75   :  { %503 = vrot.lane.b32.xlu0 %v1518_v3, %s1463_s12  ;;  %505 = vrot.lane.b32.xlu1 %v1536_v5, %s1463_s12 }
  0x79   :  { %494 = vrot.lane.b32.xlu0 %v1394_v6, %s1463_s12  ;;  %420 = vrot.lane.b32.xlu1 %v1395_v8, %s1460_s9 }
  0x7d   :  { %422 = vrot.lane.b32.xlu0 %v1397_v9, %s1460_s9  ;;  %532 = vrot.lane.b32.xlu1 %v1518_v3, %s1464_s13  ;;  %v1672_v3 = vld [vmem:[%s2270_s1] ss:$8 sps:$4 sm:$0xff]   ;;  %s1468_s1 = smov 1  }
  0x81   :  { %534 = vrot.lane.b32.xlu0 %v1536_v5, %s1464_s13  ;;  %523 = vrot.lane.b32.xlu1 %v1394_v6, %s1464_s13 }
  0x85   :  { %449 = vrot.lane.b32.xlu0 %v1395_v8, %s1461_s10  ;;  %451 = vrot.lane.b32.xlu1 %v1397_v9, %s1461_s10 }
  0x87   :  { %v309_v10 = vpop.permute.xlu0 %308  ;;  %v307_v11 = vpop.permute.xlu1 %306 }
  0x88   :  { %v315_v16 = vsel %vm314_vm1, %v307_v11, %v309_v10 }
  0x89   :  { %478 = vrot.lane.b32.xlu0 %v1395_v8, %s1462_s11  ;;  %480 = vrot.lane.b32.xlu1 %v1397_v9, %s1462_s11 }
  0x8b   :  { %v1606_v12 = vpop.permute.xlu0 %310  ;;  %v346_v14 = vpop.permute.xlu1 %345 }
  0x8c   :  { %v316_v15 = vsel %vm314_vm1, %v309_v10, %v1606_v12 }
  0x8d   :  { %507 = vrot.lane.b32.xlu0 %v1395_v8, %s1463_s12  ;;  %575 = vmatprep.subr.bf16.mxu0 %v316_v15 }
  0x8e   :  { %509 = vrot.lane.b32.xlu1 %v1397_v9, %s1463_s12  ;;  %576 = vmatpush1.bf16.msra.mxu0 %v315_v16 }
  0x8f   :  { %v1615_v17 = vpop.permute.xlu0 %347  ;;  %v344_v18 = vpop.permute.xlu1 %343 }
  0x90   :  { %v353_v19 = vsel %vm351_vm2, %v346_v14, %v1615_v17  ;;  %v352_v20 = vsel %vm351_vm2, %v344_v18, %v346_v14 }
  0x91   :  { %536 = vrot.lane.b32.xlu0 %v1395_v8, %s1464_s13  ;;  %577 = vmatprep.subr.bf16.mxu0 %v353_v19 }
  0x92   :  { %538 = vrot.lane.b32.xlu1 %v1397_v9, %s1464_s13  ;;  %578 = vmatpush1.bf16.msra.mxu0 %v352_v20 }
  0x93   :  { %v375_v22 = vpop.permute.xlu0 %374  ;;  %v1628_v24 = vpop.permute.xlu1 %376 }
  0x94   :  { %v382_v25 = vsel %vm2276_vm3, %v375_v22, %v1628_v24 }
  0x95   :  { %552 = vperm.xlu0 %1354, %v548_v21   ;;  %579 = vmatprep.subr.bf16.mxu0 %v382_v25 }
  0x96   :  { %557 = vperm.xlu1 %1355, %v549_v23  }
  0x97   :  { %v373_v26 = vpop.permute.xlu0 %372  ;;  %v404_v27 = vpop.permute.xlu1 %403 }
  0x98   :  { %v381_v28 = vsel %vm2276_vm3, %v373_v26, %v375_v22 }
  0x99   :  { %580 = vmatpush1.bf16.msra.mxu0 %v381_v28  ;;  %1362 = vrot.lane.b32.xlu0 %v1465_v13, %s1466_s20 }
  0x9a   :  { %1357 = vrot.lane.b32.xlu1 %v1465_v13, %s1467_s21 }
  0x9b   :  { %v1637_v29 = vpop.permute.xlu0 %405  ;;  %v402_v30 = vpop.permute.xlu1 %401 }
  0x9c   :  { %v411_v31 = vsel %vm2275_vm4, %v404_v27, %v1637_v29  ;;  %v410_v32 = vsel %vm2275_vm4, %v402_v30, %v404_v27 }
  0x9d   :  { %581 = vmatprep.subr.bf16.mxu0 %v411_v31  ;;  %881 = vrot.lane.b32.xlu0 %v1465_v13, %s1468_s1 }
  0x9e   :  { %582 = vmatpush1.bf16.msra.mxu0 %v410_v32  ;;  %852 = vrot.lane.b32.xlu1 %v1465_v13, %s1469_s23 }
  0x9f   :  { %v433_v33 = vpop.permute.xlu0 %432  ;;  %v1642_v34 = vpop.permute.xlu1 %434 }
  0xa0   :  { %v440_v35 = vsel %vm438_vm5, %v433_v33, %v1642_v34 }
  0xa1   :  { %583 = vmatprep.subr.bf16.mxu0 %v440_v35  ;;  %896 = vrot.lane.b32.xlu0 %v1465_v13, %s1468_s1 }
  0xa2   :  { %867 = vrot.lane.b32.xlu1 %v1465_v13, %s1469_s23 }
  0xa3   :  { %v431_v36 = vpop.permute.xlu0 %430  ;;  %v462_v37 = vpop.permute.xlu1 %461 }
  0xa4   :  { %v439_v38 = vsel %vm438_vm5, %v431_v36, %v433_v33 }
  0xa5   :  { %584 = vmatpush1.bf16.msra.mxu0 %v439_v38 }
  0xa7   :  { %v1647_v39 = vpop.permute.xlu0 %463  ;;  %v330_v40 = vpop.permute.xlu1 %329 }
  0xa8   :  { %v469_v41 = vsel %vm467_vm6, %v462_v37, %v1647_v39 }
  0xa9   :  { %585 = vmatprep.subr.bf16.mxu0 %v469_v41 }
  0xab   :  { %v332_v42 = vpop.permute.xlu0 %331  ;;  %v460_v43 = vpop.permute.xlu1 %459 }
  0xac   :  { %v337_v44 = vsel %vm314_vm1, %v330_v40, %v332_v42  ;;  %v468_v45 = vsel %vm467_vm6, %v460_v43, %v462_v37 }
  0xad   :  { %618 = vmatprep.subr.bf16.mxu1 %v337_v44  ;;  %586 = vmatpush1.bf16.msra.mxu0 %v468_v45 }
  0xaf   :  { %v313_v46 = vpop.permute.xlu0 %312  ;;  %v491_v47 = vpop.permute.xlu1 %490 }
  0xb0   :  { %v317_v48 = vsel %vm314_vm1, %v1606_v12, %v313_v46 }
  0xb1   :  { %619 = vmatpush1.bf16.msra.mxu1 %v317_v48 }
  0xb3   :  { %v1655_v49 = vpop.permute.xlu0 %492  ;;  %v359_v50 = vpop.permute.xlu1 %358 }
  0xb4   :  { %v498_v51 = vsel %vm496_vm7, %v491_v47, %v1655_v49 }
  0xb5   :  { %587 = vmatprep.subr.bf16.mxu0 %v498_v51 }
  0xb7   :  { %v361_v52 = vpop.permute.xlu0 %360  ;;  %v489_v53 = vpop.permute.xlu1 %488 }
  0xb8   :  { %v366_v54 = vsel %vm351_vm2, %v359_v50, %v361_v52  ;;  %v497_v55 = vsel %vm496_vm7, %v489_v53, %v491_v47 }
  0xb9   :  { %620 = vmatprep.subr.bf16.mxu1 %v366_v54  ;;  %588 = vmatpush1.bf16.msra.mxu0 %v497_v55 }
  0xbb   :  { %v350_v56 = vpop.permute.xlu0 %349  ;;  %v520_v57 = vpop.permute.xlu1 %519 }
  0xbc   :  { %v354_v58 = vsel %vm351_vm2, %v1615_v17, %v350_v56 }
  0xbd   :  { %621 = vmatpush1.bf16.msra.mxu1 %v354_v58 }
  0xbf   :  { %v1663_v59 = vpop.permute.xlu0 %521  ;;  %v388_v60 = vpop.permute.xlu1 %387 }
  0xc0   :  { %v527_v61 = vsel %vm525_vm8, %v520_v57, %v1663_v59 }
  0xc1   :  { %589 = vmatprep.subr.bf16.mxu0 %v527_v61 }
  0xc3   :  { %v390_v62 = vpop.permute.xlu0 %389  ;;  %v518_v0 = vpop.permute.xlu1 %517 }
  0xc4   :  { %v395_v1 = vsel %vm2276_vm3, %v388_v60, %v390_v62  ;;  %v526_v2 = vsel %vm525_vm8, %v518_v0, %v520_v57  ;;  %v36_v0 = vlaneseq }
  0xc5   :  { %622 = vmatprep.subr.bf16.mxu1 %v395_v1  ;;  %590 = vmatpush1.bf16.msra.mxu0 %v526_v2 }
  0xc6   :  { %659 = vmatprep.subr.bf16.mxu0 %v1401_v63  ;;  %v37_v1 = vand.u32 127, %v36_v0 }
  0xc7   :  { %v379_v4 = vpop.permute.xlu0 %378  ;;  %v417_v6 = vpop.permute.xlu1 %416 }
  0xc8   :  { %v383_v8 = vsel %vm2276_vm3, %v1628_v24, %v379_v4  ;;  %606 = vmatmul.mubr.bf16.vlgmr.msra.gmra.mrb[0].mxu0 %v1672_v3  ;;  %v38_v2 = vadd.s32 128, %v37_v1 }
  0xc9   :  { %623 = vmatpush1.bf16.msra.mxu1 %v383_v8  ;;  %660 = vmatpush1.bf16.msra.mxu0 %v1536_v5 }
  0xca   :  { %1286 = vmatprep.mubr.msk.bf16.mxu0 %vm569_vm0, %v1556_v7 }
  0xcb   :  { %v419_v9 = vpop.permute.xlu0 %418  ;;  %v408_v10 = vpop.permute.xlu1 %407 }
  0xcc   :  { %v424_v11 = vsel %vm2275_vm4, %v417_v6, %v419_v9  ;;  %v412_v12 = vsel %vm2275_vm4, %v1637_v29, %v408_v10  ;;  %v1721_v4 = vmul.u32.u64.low 2863311531, %v37_v1  ;;  %v1722_v6 = vmul.u32.u64.high 2863311531, %v37_v1, %v1721_v4 }
  0xcd   :  { %624 = vmatprep.subr.bf16.mxu1 %v424_v11 }
  0xce   :  { %625 = vmatpush1.bf16.msra.mxu1 %v412_v12 }
  0xcf   :  { %v334_v14 = vpop.permute.xlu0 %333  ;;  %v336_v16 = vpop.permute.xlu1 %335 }
  0xd0   :  { %v338_v15 = vsel %vm314_vm1, %v332_v42, %v334_v14  ;;  %v339_v17 = vsel %vm314_vm1, %v334_v14, %v336_v16 }
  0xd1   :  { %661 = vmatprep.subr.bf16.mxu0 %v339_v17 }
  0xd2   :  { %662 = vmatpush1.bf16.msra.mxu0 %v338_v15 }
  0xd3   :  { %v446_v5 = vpop.permute.xlu0 %445  ;;  %v448_v18 = vpop.permute.xlu1 %447 }
  0xd4   :  { %v453_v7 = vsel %vm438_vm5, %v446_v5, %v448_v18 }
  0xd5   :  { %626 = vmatprep.subr.bf16.mxu1 %v453_v7 }
  0xd7   :  { %v437_v19 = vpop.permute.xlu0 %436  ;;  %v363_v20 = vpop.permute.xlu1 %362 }
  0xd8   :  { %v441_v21 = vsel %vm438_vm5, %v1642_v34, %v437_v19  ;;  %v367_v25 = vsel %vm351_vm2, %v361_v52, %v363_v20 }
  0xd9   :  { %627 = vmatpush1.bf16.msra.mxu1 %v441_v21 }
  0xdb   :  { %v365_v22 = vpop.permute.xlu0 %364  ;;  %v475_v23 = vpop.permute.xlu1 %474 }
  0xdc   :  { %v368_v24 = vsel %vm351_vm2, %v363_v20, %v365_v22 }
  0xdd   :  { %663 = vmatprep.subr.bf16.mxu0 %v368_v24 }
  0xde   :  { %664 = vmatpush1.bf16.msra.mxu0 %v367_v25 }
  0xdf   :  { %v477_v26 = vpop.permute.xlu0 %476  ;;  %v466_v27 = vpop.permute.xlu1 %465 }
  0xe0   :  { %v482_v28 = vsel %vm467_vm6, %v475_v23, %v477_v26  ;;  %v470_v29 = vsel %vm467_vm6, %v1647_v39, %v466_v27  ;;  %v40_v27 = vadd.s32 384, %v37_v1 }
  0xe1   :  { %628 = vmatprep.subr.bf16.mxu1 %v482_v28 }
  0xe2   :  { %629 = vmatpush1.bf16.msra.mxu1 %v470_v29 }
  0xe3   :  { %v392_v30 = vpop.permute.xlu0 %391  ;;  %v394_v32 = vpop.permute.xlu1 %393 }
  0xe4   :  { %v396_v31 = vsel %vm2276_vm3, %v390_v62, %v392_v30  ;;  %v397_v33 = vsel %vm2276_vm3, %v392_v30, %v394_v32 }
  0xe5   :  { %665 = vmatprep.subr.bf16.mxu0 %v397_v33  ;;  %v1748_v32 = vmul.u32.u64.low 2863311531, %v40_v27  ;;  %v1749_v33 = vmul.u32.u64.high 2863311531, %v40_v27, %v1748_v32 }
  0xe6   :  { %666 = vmatpush1.bf16.msra.mxu0 %v396_v31 }
  0xe7   :  { %v504_v34 = vpop.permute.xlu0 %503  ;;  %v506_v35 = vpop.permute.xlu1 %505 }
  0xe8   :  { %v511_v36 = vsel %vm496_vm7, %v504_v34, %v506_v35 }
  0xe9   :  { %630 = vmatprep.subr.bf16.mxu1 %v511_v36 }
  0xeb   :  { %v495_v37 = vpop.permute.xlu0 %494  ;;  %v421_v38 = vpop.permute.xlu1 %420 }
  0xec   :  { %v499_v40 = vsel %vm496_vm7, %v1655_v49, %v495_v37  ;;  %v425_v43 = vsel %vm2275_vm4, %v419_v9, %v421_v38  ;;  %v49_v9 = vshrl.u32 %v1722_v6, 8 }
  0xed   :  { %631 = vmatpush1.bf16.msra.mxu1 %v499_v40  ;;  %v82_v40 = vshrl.u32 %v1749_v33, 8 }
  0xee   :  { %v50_v11 = vmul.u32 384, %v49_v9 }
  0xef   :  { %v423_v39 = vpop.permute.xlu0 %422  ;;  %v533_v41 = vpop.permute.xlu1 %532 }
  0xf0   :  { %v426_v42 = vsel %vm2275_vm4, %v421_v38, %v423_v39  ;;  %v51_v14 = vsub.s32 %v37_v1, %v50_v11 }
  0xf1   :  { %667 = vmatprep.subr.bf16.mxu0 %v426_v42 }
  0xf2   :  { %668 = vmatpush1.bf16.msra.mxu0 %v425_v43  ;;  %vm109_vm9 = vcmp.ne.s32.totalorder %v51_v14, 0  ;;  %vm115_vm10 = vcmp.lt.s32.totalorder %v51_v14, 0  ;;  %v127_v16 = vadd.s32 384, %v51_v14  ;;  %v83_v43 = vmul.u32 384, %v82_v40 }
  0xf3   :  { %v535_v44 = vpop.permute.xlu0 %534  ;;  %v524_v45 = vpop.permute.xlu1 %523  ;;  %vm121_vm13 = vmand %vm115_vm10, %vm109_vm9 }
  0xf4   :  { %v540_v46 = vsel %vm525_vm8, %v533_v41, %v535_v44  ;;  %v528_v47 = vsel %vm525_vm8, %v1663_v59, %v524_v45  ;;  %v1729_v5 = vsel %vm121_vm13, %v127_v16, %v51_v14 }
  0xf5   :  { %632 = vmatprep.subr.bf16.mxu1 %v540_v46  ;;  %v140_v7 = vsub.s32 0, %v1729_v5  ;;  %vm139_vm15 = vcmp.lt.s32.totalorder %v1729_v5, 0  ;;  %v1755_v46 = vadd.s32 512, %v37_v1 }
  0xf6   :  { %633 = vmatpush1.bf16.msra.mxu1 %v528_v47 }
  0xf7   :  { %v450_v48 = vpop.permute.xlu0 %449  ;;  %v452_v50 = vpop.permute.xlu1 %451  ;;  %v1266_v20 = vmin.u32 %v140_v7, %v1729_v5 }
  0xf8   :  { %v454_v49 = vsel %vm438_vm5, %v448_v18, %v450_v48  ;;  %v455_v51 = vsel %vm438_vm5, %v450_v48, %v452_v50  ;;  %v1757_v48 = vadd.s32 640, %v37_v1 }
  0xf9   :  { %649 = vmatmul.mubr.bf16.vlgmr.msra.gmra.mrb[0].mxu1 %v1672_v3  ;;  %669 = vmatprep.subr.bf16.mxu0 %v455_v51  ;;  %v1737_v22 = vmul.u32.u64.low 3817748708, %v1266_v20  ;;  %v1738_v23 = vmul.u32.u64.high 3817748708, %v1266_v20, %v1737_v22  ;;  %v1760_v50 = vmul.u32.u64.low 2863311531, %v1755_v46  ;;  %v1761_v51 = vmul.u32.u64.high 2863311531, %v1755_v46, %v1760_v50 }
  0xfa   :  { %670 = vmatpush1.bf16.msra.mxu0 %v454_v49  ;;  %v84_v49 = vsub.s32 %v40_v27, %v83_v43 }
  0xfb   :  { %v479_v52 = vpop.permute.xlu0 %478  ;;  %v481_v54 = vpop.permute.xlu1 %480  ;;  %v145_v30 = vshrl.u32 %v1738_v23, 4  ;;  %v93_v4 = vshrl.u32 %v1761_v51, 8 }
  0xfc   :  { %v483_v53 = vsel %vm467_vm6, %v477_v26, %v479_v52  ;;  %v484_v55 = vsel %vm467_vm6, %v479_v52, %v481_v54  ;;  %v39_v26 = vadd.s32 256, %v37_v1  ;;  %vm118_vm13 = vcmp.lt.s32.totalorder %v84_v49, 0 }
  0xfd   :  { %671 = vmatprep.subr.bf16.mxu0 %v484_v55  ;;  %v146_v34 = vmul.u32 18, %v145_v30 }
  0xfe   :  { %672 = vmatpush1.bf16.msra.mxu0 %v483_v53  ;;  %v1743_v28 = vmul.u32.u64.low 2863311531, %v39_v26  ;;  %v1744_v29 = vmul.u32.u64.high 2863311531, %v39_v26, %v1743_v28  ;;  %v1764_v53 = vmul.u32.u64.low 2863311531, %v1757_v48  ;;  %v1765_v54 = vmul.u32.u64.high 2863311531, %v1757_v48, %v1764_v53 }
  0xff   :  { %v508_v56 = vpop.permute.xlu0 %507  ;;  %v147_v37 = vsub.s32 %v1266_v20, %v146_v34 }
 0x100   :  { %v512_v57 = vsel %vm496_vm7, %v506_v35, %v508_v56  ;;  %v510_v58 = vpop.permute.xlu1 %509  ;;  %v71_v36 = vshrl.u32 %v1744_v29, 8 }
 0x101   :  { %v513_v59 = vsel %vm496_vm7, %v508_v56, %v510_v58  ;;  %v148_v41 = vsub.s32 0, %v147_v37 }
 0x102   :  { %673 = vmatprep.subr.bf16.mxu0 %v513_v59  ;;  %v72_v39 = vmul.u32 384, %v71_v36  ;;  %v130_v59 = vadd.s32 384, %v84_v49 }
 0x103   :  { %674 = vmatpush1.bf16.msra.mxu0 %v512_v57  ;;  %v537_v60 = vpop.permute.xlu0 %536  ;;  %v149_v45 = vsel %vm139_vm15, %v148_v41, %v147_v37 }
 0x104   :  { %v541_v61 = vsel %vm525_vm8, %v535_v44, %v537_v60  ;;  %v539_v62 = vpop.permute.xlu1 %538  ;;  %v73_v44 = vsub.s32 %v39_v26, %v72_v39  ;;  %vm205_vm5 = vcmp.ne.s32.totalorder %v149_v45, 0  ;;  %vm211_vm6 = vcmp.lt.s32.totalorder %v149_v45, 0 }
 0x105   :  { %v542_v63 = vsel %vm525_vm8, %v537_v60, %v539_v62  ;;  %v223_v52 = vadd.s32 18, %v149_v45 }
 0x106   :  { %675 = vmatprep.subr.bf16.mxu0 %v542_v63  ;;  %vm111_vm7 = vcmp.ne.s32.totalorder %v73_v44, 0  ;;  %vm117_vm10 = vcmp.lt.s32.totalorder %v73_v44, 0  ;;  %v129_v58 = vadd.s32 384, %v73_v44 }
 0x107   :  { %676 = vmatpush1.bf16.msra.mxu0 %v541_v61  ;;  %vm123_vm15 = vmand %vm117_vm10, %vm111_vm7 }
 0x108   :  { %v1781_v63 = vsel %vm123_vm15, %v129_v58, %v73_v44 }
 0x109   :  { %v162_v11 = vsub.s32 0, %v1781_v63 }
 0x10a   :  { %692 = vmatmul.mubr.bf16.vlgmr.msra.gmra.mrb[4].mxu0 %v1672_v3  ;;  %v1724_v3 = vmul.u32.u64.low 2863311531, %v38_v2  ;;  %v1725_v8 = vmul.u32.u64.high 2863311531, %v38_v2, %v1724_v3 }
 0x10c   :  { %v60_v10 = vshrl.u32 %v1725_v8, 8  ;;  %v104_v8 = vshrl.u32 %v1765_v54, 8 }
 0x10e   :  { %v61_v12 = vmul.u32 384, %v60_v10  ;;  %v105_v22 = vmul.u32 384, %v104_v8 }
 0x110   :  { %v62_v15 = vsub.s32 %v38_v2, %v61_v12 }
 0x112   :  { %vm110_vm11 = vcmp.ne.s32.totalorder %v62_v15, 0  ;;  %vm116_vm12 = vcmp.lt.s32.totalorder %v62_v15, 0  ;;  %v128_v17 = vadd.s32 384, %v62_v15 }
 0x113   :  { %vm122_vm14 = vmand %vm116_vm12, %vm110_vm11  ;;  %vm112_vm12 = vcmp.ne.s32.totalorder %v84_v49, 0 }
 0x114   :  { %v1731_v18 = vsel %vm122_vm14, %v128_v17, %v62_v15  ;;  %vm1767_vm11 = vmand %vm211_vm6, %vm205_vm5  ;;  %v1777_v61 = vpop.permute.xlu0 %552  ;;  %vm241_vm6 = vcmp.lt.s32.totalorder %v1729_v5, 288 }
 0x115   :  { %v151_v19 = vsub.s32 0, %v1731_v18  ;;  %vm150_vm2 = vcmp.lt.s32.totalorder %v1731_v18, 0  ;;  %v229_v60 = vsel %vm1767_vm11, %v223_v52, %v149_v45  ;;  %v1783_v1 = vpop.permute.xlu1 %557 }
 0x116   :  { %vm235_vm5 = vcmp.lt.s32.totalorder %v229_v60, 16 }
 0x117   :  { %v1267_v21 = vmin.u32 %v151_v19, %v1731_v18  ;;  %v94_v19 = vmul.u32 384, %v93_v4 }
 0x119   :  { %v1740_v24 = vmul.u32.u64.low 3817748708, %v1267_v21  ;;  %v1741_v25 = vmul.u32.u64.high 3817748708, %v1267_v21, %v1740_v24 }
 0x11b   :  { %v156_v31 = vshrl.u32 %v1741_v25, 4 }
 0x11d   :  { %v157_v35 = vmul.u32 18, %v156_v31  ;;  %v1268_v31 = vmin.u32 %v162_v11, %v1781_v63 }
 0x11f   :  { %v158_v38 = vsub.s32 %v1267_v21, %v157_v35  ;;  %v95_v35 = vsub.s32 %v1755_v46, %v94_v19  ;;  %v1841_v40 = vmul.u32.u64.low 3817748708, %v1268_v31  ;;  %v1842_v39 = vmul.u32.u64.high 3817748708, %v1268_v31, %v1841_v40 }
 0x121   :  { %v159_v42 = vsub.s32 0, %v158_v38  ;;  %vm113_vm15 = vcmp.ne.s32.totalorder %v95_v35, 0  ;;  %v131_v43 = vadd.s32 384, %v95_v35 }
 0x123   :  { %v160_v47 = vsel %vm150_vm2, %v159_v42, %v158_v38  ;;  %vm124_vm2 = vmand %vm118_vm13, %vm112_vm12  ;;  %v106_v38 = vsub.s32 %v1757_v48, %v105_v22 }
 0x124   :  { %vm206_vm8 = vcmp.ne.s32.totalorder %v160_v47, 0  ;;  %vm212_vm9 = vcmp.lt.s32.totalorder %v160_v47, 0  ;;  %v224_v56 = vadd.s32 18, %v160_v47  ;;  %v1786_v2 = vsel %vm124_vm2, %v130_v59, %v84_v49 }
 0x125   :  { %vm1771_vm14 = vmand %vm212_vm9, %vm206_vm8  ;;  %vm242_vm8 = vcmp.lt.s32.totalorder %v1731_v18, 288  ;;  %v173_v17 = vsub.s32 0, %v1786_v2  ;;  %vm119_vm2 = vcmp.lt.s32.totalorder %v95_v35, 0  ;;  %v132_v44 = vadd.s32 384, %v106_v38 }
 0x126   :  { %v230_v62 = vsel %vm1771_vm14, %v224_v56, %v160_v47  ;;  %vm1794_vm9 = vmand %vm235_vm5, %vm241_vm6  ;;  %vm114_vm5 = vcmp.ne.s32.totalorder %v106_v38, 0  ;;  %vm120_vm6 = vcmp.lt.s32.totalorder %v106_v38, 0  ;;  %v167_v47 = vshrl.u32 %v1842_v39, 4 }
 0x127   :  { %vm236_vm7 = vcmp.lt.s32.totalorder %v230_v62, 16  ;;  %v1269_v37 = vmin.u32 %v173_v17, %v1786_v2 }
 0x128   :  { %vm1800_vm11 = vmand %vm236_vm7, %vm242_vm8  ;;  %v168_v51 = vmul.u32 18, %v167_v47 }
 0x129   :  { %v1844_v41 = vmul.u32.u64.low 3817748708, %v1269_v37  ;;  %v1845_v42 = vmul.u32.u64.high 3817748708, %v1269_v37, %v1844_v41  ;;  %vm125_vm7 = vmand %vm119_vm2, %vm113_vm15 }
 0x12a   :  { %vm126_vm8 = vmand %vm120_vm6, %vm114_vm5  ;;  %v1853_v45 = vsel %vm125_vm7, %v131_v43, %v95_v35  ;;  %v169_v55 = vsub.s32 %v1268_v31, %v168_v51 }
 0x12b   :  { %v1855_v46 = vsel %vm126_vm8, %v132_v44, %v106_v38  ;;  %v178_v48 = vshrl.u32 %v1845_v42, 4  ;;  %v184_v49 = vsub.s32 0, %v1853_v45  ;;  %vm243_vm8 = vcmp.lt.s32.totalorder %v1781_v63, 288 }
 0x12c   :  { %v195_v50 = vsub.s32 0, %v1855_v46  ;;  %v170_v62 = vsub.s32 0, %v169_v55 }
 0x12d   :  { %v179_v52 = vmul.u32 18, %v178_v48  ;;  %v1270_v53 = vmin.u32 %v184_v49, %v1853_v45 }
 0x12e   :  { %v1271_v54 = vmin.u32 %v195_v50, %v1855_v46 }
 0x12f   :  { %v180_v56 = vsub.s32 %v1269_v37, %v179_v52  ;;  %v1863_v57 = vmul.u32.u64.low 3817748708, %v1270_v53  ;;  %v1864_v58 = vmul.u32.u64.high 3817748708, %v1270_v53, %v1863_v57 }
 0x130   :  { %v1866_v59 = vmul.u32.u64.low 3817748708, %v1271_v54  ;;  %v1867_v60 = vmul.u32.u64.high 3817748708, %v1271_v54, %v1866_v59 }
 0x132   :  { %v200_v8 = vshrl.u32 %v1867_v60, 4 }
 0x19b   :  { %v607_v0 = vpop.f32.mrb[0].mxu0 }
 0x19c   :  { %v609_v6 = vpop.f32.mrb[1].mxu0  ;;  %v608_v3 = vadd.f32 %v607_v0, %v1777_v61  ;;  %v181_v0 = vsub.s32 0, %v180_v56 }
 0x19d   :  { %v611_v9 = vpop.f32.mrb[2].mxu0  ;;  %v610_v10 = vadd.f32 %v609_v6, %v1777_v61 }
 0x19e   :  { %v612_v14 = vadd.f32 %v611_v9, %v1783_v1  ;;  %vm702_vm10 = vcmp.ge.f32.partialorder %v608_v3, 0.0  ;;  %v714_v15 = vmul.f32 0.2, %v608_v3  ;;  %v613_v16 = vpop.f32.mrb[3].mxu0 }
 0x19f   :  { %v614_v18 = vadd.f32 %v613_v16, %v1783_v1  ;;  %vm703_vm12 = vcmp.ge.f32.partialorder %v610_v10, 0.0  ;;  %v715_v7 = vmul.f32 0.2, %v610_v10 }
 0x1a0   :  { %vm708_vm13 = vcmp.ge.f32.partialorder %v612_v14, 0.0  ;;  %v720_v20 = vmul.f32 0.2, %v612_v14  ;;  %v1805_v21 = vsel %vm702_vm10, %v608_v3, %v714_v15  ;;  %vm161_vm10 = vcmp.lt.s32.totalorder %v1781_v63, 0 }
 0x1a1   :  { %v750_v23 = vsel %vm1794_vm9, %v1805_v21, 0.0  ;;  %vm709_vm14 = vcmp.ge.f32.partialorder %v614_v18, 0.0  ;;  %v721_v24 = vmul.f32 0.2, %v614_v18  ;;  %v1810_v25 = vsel %vm703_vm12, %v610_v10, %v715_v7 }
 0x1a2   :  { %v1812_v26 = vsel %vm708_vm13, %v612_v14, %v720_v20  ;;  %v751_v27 = vsel %vm1800_vm11, %v1810_v25, 0.0  ;;  %vm172_vm12 = vcmp.lt.s32.totalorder %v1786_v2, 0  ;;  %v171_v4 = vsel %vm161_vm10, %v170_v62, %v169_v55 }
 0x1a3   :  { %v756_v28 = vsel %vm1794_vm9, %v1812_v26, 0.0  ;;  %v1296_v29 = vpack.c.bf16 %v1812_v26, %v1805_v21  ;;  %v1822_v30 = vsel %vm709_vm14, %v614_v18, %v721_v24  ;;  %v182_v6 = vsel %vm172_vm12, %v181_v0, %v180_v56 }
 0x1a4   :  { %v1825_v32 = vpack.c.bf16 %v756_v28, %v750_v23  ;;  %v757_v33 = vsel %vm1800_vm11, %v1822_v30, 0.0  ;;  %v1293_v34 = vpack.c.bf16 %v1822_v30, %v1810_v25  ;;  %v189_v3 = vshrl.u32 %v1864_v58, 4 }
 0x1a5   :  { %v1833_v36 = vpack.c.bf16 %v757_v33, %v751_v27  ;;  %vm207_vm13 = vcmp.ne.s32.totalorder %v171_v4, 0  ;;  %vm213_vm14 = vcmp.lt.s32.totalorder %v171_v4, 0  ;;  %vm208_vm15 = vcmp.ne.s32.totalorder %v182_v6, 0 }
 0x1a6   :  { %825 = vrot.lane.b32.xlu0 %v1825_v32, %s1466_s20  ;;  %792 = vrot.lane.b32.xlu1 %v1825_v32, %s1467_s21  ;;  %vm214_vm2 = vcmp.lt.s32.totalorder %v182_v6, 0  ;;  %v225_v9 = vadd.s32 18, %v171_v4  ;;  %v190_v10 = vmul.u32 18, %v189_v3  ;;  %vm219_vm5 = vmand %vm213_vm14, %vm207_vm13  ;;  %v226_v11 = vadd.s32 18, %v182_v6 }
 0x1a7   :  { %v201_v14 = vmul.u32 18, %v200_v8  ;;  %vm220_vm6 = vmand %vm214_vm2, %vm208_vm15  ;;  %vm244_vm10 = vcmp.lt.s32.totalorder %v1786_v2, 288  ;;  %vm183_vm13 = vcmp.lt.s32.totalorder %v1853_v45, 0  ;;  %vm194_vm2 = vcmp.lt.s32.totalorder %v1855_v46, 0 }
 0x1a8   :  { %v231_v15 = vsel %vm219_vm5, %v225_v9, %v171_v4  ;;  %v191_v16 = vsub.s32 %v1270_v53, %v190_v10  ;;  %v232_v17 = vsel %vm220_vm6, %v226_v11, %v182_v6 }
 0x1a9   :  { %v202_v18 = vsub.s32 %v1271_v54, %v201_v14  ;;  %vm1873_vm7 = vcmp.lt.s32.totalorder %v231_v15, 16  ;;  %vm1880_vm12 = vcmp.lt.s32.totalorder %v232_v17, 16 }
 0x1aa   :  { %883 = vrot.lane.b32.xlu0 %v1825_v32, %s1468_s1  ;;  %854 = vrot.lane.b32.xlu1 %v1825_v32, %s1469_s23  ;;  %v192_v28 = vsub.s32 0, %v191_v16  ;;  %vm1893_vm5 = vmand %vm1873_vm7, %vm243_vm8 }
 0x1ab   :  { %v203_v37 = vsub.s32 0, %v202_v18  ;;  %vm1903_vm4 = vmand %vm1880_vm12, %vm244_vm10 }
 0x1ac   :  { %v193_v48 = vsel %vm183_vm13, %v192_v28, %v191_v16 }
 0x1ad   :  { %v204_v49 = vsel %vm194_vm2, %v203_v37, %v202_v18  ;;  %vm209_vm7 = vcmp.ne.s32.totalorder %v193_v48, 0  ;;  %vm215_vm8 = vcmp.lt.s32.totalorder %v193_v48, 0  ;;  %v227_v58 = vadd.s32 18, %v193_v48  ;;  %v2060_v37 = vpop.permute.xlu0 %1362 }
 0x1ae   :  { %916 = vrot.lane.b32.xlu1 %v1825_v32, %s1457_s7  ;;  %vm216_vm10 = vcmp.lt.s32.totalorder %v204_v49, 0  ;;  %vm221_vm12 = vmand %vm215_vm8, %vm209_vm7  ;;  %v228_v59 = vadd.s32 18, %v204_v49  ;;  %vm246_vm2 = vcmp.lt.s32.totalorder %v1855_v46, 288 }
 0x1af   :  { %v233_v62 = vsel %vm221_vm12, %v227_v58, %v193_v48  ;;  %v1036_v48 = vld [vmem:[%s2273_s4 + $0x8] sm:$0xff] }
 0x1cc   :  { %v650_v7 = vpop.f32.mrb[0].mxu1 }
 0x1cd   :  { %v651_v20 = vadd.f32 %v650_v7, %v1777_v61  ;;  %v652_v22 = vpop.f32.mrb[1].mxu1 }
 0x1ce   :  { %v653_v24 = vadd.f32 %v652_v22, %v1777_v61  ;;  %v654_v27 = vpop.f32.mrb[2].mxu1 }
 0x1cf   :  { %vm704_vm14 = vcmp.ge.f32.partialorder %v651_v20, 0.0  ;;  %v716_v31 = vmul.f32 0.2, %v651_v20  ;;  %v655_v33 = vadd.f32 %v654_v27, %v1783_v1  ;;  %v656_v35 = vpop.f32.mrb[3].mxu1 }
 0x1d0   :  { %vm705_vm15 = vcmp.ge.f32.partialorder %v653_v24, 0.0  ;;  %v717_v38 = vmul.f32 0.2, %v653_v24  ;;  %v657_v40 = vadd.f32 %v656_v35, %v1783_v1  ;;  %v2028_v35 = vld [vmem:[%s2272_s3 + $0x4] ss:$8 sps:$4 sm:$0xff]  }
 0x1d1   :  { %v1897_v41 = vsel %vm704_vm14, %v651_v20, %v716_v31  ;;  %vm710_vm6 = vcmp.ge.f32.partialorder %v655_v33, 0.0  ;;  %v722_v42 = vmul.f32 0.2, %v655_v33  ;;  %vm1946_vm14 = vcmp.lt.s32.totalorder %v233_v62, 16  ;;  %1289 = vmatprep.mubr.msk.bf16.mxu1 %vm569_vm0, %v2028_v35  ;;  %1290 = vmatprep.mubr.msk.bf16.mxu0 %vm569_vm0, %v2028_v35 }
 0x1d2   :  { %v1907_v44 = vsel %vm705_vm15, %v653_v24, %v717_v38  ;;  %vm711_vm3 = vcmp.ge.f32.partialorder %v657_v40, 0.0  ;;  %v723_v63 = vmul.f32 0.2, %v657_v40  ;;  %v752_v2 = vsel %vm1893_vm5, %v1897_v41, 0.0 }
 0x1d3   :  { %v1909_v47 = vsel %vm710_vm6, %v655_v33, %v722_v42  ;;  %v753_v53 = vsel %vm1903_vm4, %v1907_v44, 0.0  ;;  %vm245_vm15 = vcmp.lt.s32.totalorder %v1853_v45, 288  ;;  %v882_v42 = vpop.permute.xlu0 %881 }
 0x1d4   :  { %v758_v50 = vsel %vm1893_vm5, %v1909_v47, 0.0  ;;  %v1302_v51 = vpack.c.bf16 %v1909_v47, %v1897_v41  ;;  %v1921_v52 = vsel %vm711_vm3, %v657_v40, %v723_v63  ;;  %vm210_vm3 = vcmp.ne.s32.totalorder %v204_v49, 0  ;;  %v1035_v40 = vld [vmem:[%s2273_s4] sm:$0xff] }
 0x1d5   :  { %v764_v54 = vpack.c.bf16 %v758_v50, %v752_v2  ;;  %v759_v55 = vsel %vm1903_vm4, %v1921_v52, 0.0  ;;  %v1299_v56 = vpack.c.bf16 %v1921_v52, %v1907_v44  ;;  %vm1935_vm13 = vmand %vm216_vm10, %vm210_vm3 }
 0x1d6   :  { %v1931_v57 = vpack.c.bf16 %v759_v55, %v753_v53  ;;  %v234_v4 = vsel %vm1935_vm13, %v228_v59, %v204_v49  ;;  %vm1959_vm3 = vmand %vm1946_vm14, %vm245_vm15  ;;  %vm798_vm14 = vcmask 154624   ;;  %vm831_vm15 = vcmask 146432  }
 0x1d7   :  { %920 = vrot.lane.b32.xlu0 %v764_v54, %s1457_s7  ;;  %952 = vrot.lane.b32.xlu1 %v764_v54, %s1470_s24  ;;  %vm240_vm7 = vcmp.lt.s32.totalorder %v234_v4, 16  ;;  %v2074_v49 = vpop.permute.xlu0 %896 }
 0x1d8   :  { %vm1967_vm12 = vmand %vm240_vm7, %vm246_vm2  ;;  %vm860_vm2 = vcmask 138240  }
 0x1d9   :  { %vm1292_vm7 = vmpackc.low %vm1800_vm11, %vm1800_vm11 }
 0x1db   :  { %948 = vrot.lane.b32.xlu0 %v1825_v32, %s1470_s24  ;;  %977 = vrot.lane.b32.xlu1 %v1825_v32, %s1459_s0 }
 0x1dd   :  { %v693_v0 = vpop.f32.mrb[4].mxu0 }
 0x1de   :  { %v694_v6 = vadd.f32 %v693_v0, %v1777_v61  ;;  %v695_v3 = vpop.f32.mrb[5].mxu0 }
 0x1df   :  { %v696_v9 = vadd.f32 %v695_v3, %v1777_v61  ;;  %v697_v10 = vpop.f32.mrb[6].mxu0  ;;  %981 = vrot.lane.b32.xlu0 %v764_v54, %s1459_s0  ;;  %1009 = vrot.lane.b32.xlu1 %v764_v54, %s1460_s9 }
 0x1e0   :  { %vm706_vm6 = vcmp.ge.f32.partialorder %v694_v6, 0.0  ;;  %v718_v11 = vmul.f32 0.2, %v694_v6  ;;  %v698_v14 = vadd.f32 %v697_v10, %v1783_v1  ;;  %v699_v15 = vpop.f32.mrb[7].mxu0 }
 0x1e1   :  { %vm707_vm8 = vcmp.ge.f32.partialorder %v696_v9, 0.0  ;;  %v719_v16 = vmul.f32 0.2, %v696_v9  ;;  %v700_v17 = vadd.f32 %v699_v15, %v1783_v1 }
 0x1e2   :  { %v1963_v61 = vsel %vm706_vm6, %v694_v6, %v718_v11  ;;  %vm712_vm10 = vcmp.ge.f32.partialorder %v698_v14, 0.0  ;;  %v724_v18 = vmul.f32 0.2, %v698_v14  ;;  %vm2278_vm6 = vcmask 7168  }
 0x1e3   :  { %v1971_v19 = vsel %vm707_vm8, %v696_v9, %v719_v16  ;;  %vm713_vm13 = vcmp.ge.f32.partialorder %v700_v17, 0.0  ;;  %v725_v1 = vmul.f32 0.2, %v700_v17  ;;  %1005 = vrot.lane.b32.xlu0 %v1825_v32, %s1460_s9  ;;  %858 = vrot.lane.b32.xlu1 %v764_v54, %s1469_s23  ;;  %v754_v22 = vsel %vm1959_vm3, %v1963_v61, 0.0  ;;  %vm1295_vm8 = vmpackc.low %vm1794_vm9, %vm1794_vm9 }
 0x1e4   :  { %v1976_v20 = vsel %vm712_vm10, %v698_v14, %v724_v18  ;;  %v755_v32 = vsel %vm1967_vm12, %v1971_v19, 0.0  ;;  %v1364_v16 = vunpack.i.l.bf16 %v2060_v37  ;;  %vm2277_vm10 = vcmask 908288  }
 0x1e5   :  { %v760_v46 = vsel %vm1959_vm3, %v1976_v20, 0.0  ;;  %v1308_v23 = vpack.c.bf16 %v1976_v20, %v1963_v61  ;;  %v1986_v24 = vsel %vm713_vm13, %v700_v17, %v725_v1  ;;  %vm2303_vm13 = vcmask 900096  }
 0x1e6   :  { %v766_v27 = vpack.c.bf16 %v760_v46, %v754_v22  ;;  %v761_v28 = vsel %vm1967_vm12, %v1986_v24, 0.0  ;;  %v1305_v31 = vpack.c.bf16 %v1986_v24, %v1971_v19 }
 0x1e7   :  { %v767_v33 = vpack.c.bf16 %v761_v28, %v755_v32  ;;  %796 = vrot.lane.b32.xlu0 %v764_v54, %s1467_s21  ;;  %827 = vrot.lane.b32.xlu1 %v1833_v36, %s1466_s20 }
 0x1eb   :  { %829 = vrot.lane.b32.xlu0 %v764_v54, %s1466_s20  ;;  %885 = vrot.lane.b32.xlu1 %v1833_v36, %s1468_s1 }
 0x1ef   :  { %794 = vrot.lane.b32.xlu0 %v1833_v36, %s1467_s21  ;;  %918 = vrot.lane.b32.xlu1 %v1833_v36, %s1457_s7 }
 0x1f3   :  { %887 = vrot.lane.b32.xlu0 %v764_v54, %s1468_s1  ;;  %979 = vrot.lane.b32.xlu1 %v1833_v36, %s1459_s0 }
 0x1f7   :  { %856 = vrot.lane.b32.xlu0 %v1833_v36, %s1469_s23  ;;  %811 = vrot.lane.b32.xlu1 %v1931_v57, %s1467_s21 }
 0x1fb   :  { %1367 = vrot.lane.b32.xlu0 %v1465_v13, %s1457_s7  ;;  %840 = vrot.lane.b32.xlu1 %v1931_v57, %s1466_s20 }
 0x1ff   :  { %950 = vrot.lane.b32.xlu0 %v1833_v36, %s1470_s24  ;;  %898 = vrot.lane.b32.xlu1 %v1931_v57, %s1468_s1 }
 0x203   :  { %1007 = vrot.lane.b32.xlu0 %v1833_v36, %s1460_s9  ;;  %934 = vrot.lane.b32.xlu1 %v1931_v57, %s1457_s7  ;;  %v1358_v36 = vpop.permute.xlu1 %1357 }
 0x204   :  { %v1359_v10 = vunpack.i.l.bf16 %v1358_v36  ;;  %v1360_v32 = vunpack.i.h.bf16 %v1358_v36 }
 0x207   :  { %869 = vrot.lane.b32.xlu0 %v1931_v57, %s1469_s23  ;;  %963 = vrot.lane.b32.xlu1 %v1931_v57, %s1470_s24  ;;  %v853_v38 = vpop.permute.xlu1 %852 }
 0x20b   :  { %813 = vrot.lane.b32.xlu0 %v766_v27, %s1467_s21  ;;  %871 = vrot.lane.b32.xlu1 %v766_v27, %s1469_s23  ;;  %v2067_v63 = vpop.permute.xlu1 %867 }
 0x20f   :  { %842 = vrot.lane.b32.xlu0 %v766_v27, %s1466_s20  ;;  %815 = vrot.lane.b32.xlu1 %v767_v33, %s1467_s21 }
 0x213   :  { %900 = vrot.lane.b32.xlu0 %v766_v27, %s1468_s1  ;;  %844 = vrot.lane.b32.xlu1 %v767_v33, %s1466_s20 }
 0x217   :  { %936 = vrot.lane.b32.xlu0 %v766_v27, %s1457_s7  ;;  %991 = vrot.lane.b32.xlu1 %v1931_v57, %s1459_s0 }
 0x218   :  { %v793_v2 = vpop.permute.xlu1 %792  ;;  %v826_v50 = vpop.permute.xlu0 %825 }
 0x219   :  { %v799_v17 = vsel %vm798_vm14, %v1359_v10, %v793_v2  ;;  %v832_v46 = vsel %vm831_vm15, %v1364_v16, %v826_v50 }
 0x21b   :  { %873 = vrot.lane.b32.xlu0 %v767_v33, %s1469_s23  ;;  %902 = vrot.lane.b32.xlu1 %v767_v33, %s1468_s1 }
 0x21c   :  { %v855_v53 = vpop.permute.xlu1 %854  ;;  %v884_v54 = vpop.permute.xlu0 %883 }
 0x21f   :  { %965 = vrot.lane.b32.xlu0 %v766_v27, %s1470_s24  ;;  %1019 = vrot.lane.b32.xlu1 %v1931_v57, %s1460_s9 }
 0x220   :  { %v2076_v55 = vpop.permute.xlu1 %916 }
 0x223   :  { %1372 = vrot.lane.b32.xlu0 %v1465_v13, %s1470_s24  ;;  %938 = vrot.lane.b32.xlu1 %v767_v33, %s1457_s7 }
 0x227   :  { %993 = vrot.lane.b32.xlu0 %v766_v27, %s1459_s0  ;;  %967 = vrot.lane.b32.xlu1 %v767_v33, %s1470_s24 }
 0x22b   :  { %1377 = vrot.lane.b32.xlu0 %v1465_v13, %s1459_s0  ;;  %995 = vrot.lane.b32.xlu1 %v767_v33, %s1459_s0 }
 0x22f   :  { %1021 = vrot.lane.b32.xlu0 %v766_v27, %s1460_s9  ;;  %1023 = vrot.lane.b32.xlu1 %v767_v33, %s1460_s9 }
 0x233   :  { %1382 = vrot.lane.b32.xlu0 %v1465_v13, %s1460_s9  ;;  %1039 = vperm.xlu1 %1355, %v1035_v40  }
 0x237   :  { %1044 = vperm.xlu0 %1354, %v1036_v48   ;;  %v861_v48 = vsel %vm860_vm2, %v853_v38, %v855_v53  ;;  %v890_v38 = vsel %vm2278_vm6, %v882_v42, %v884_v54 }
 0x249   :  { %v2078_v57 = vpop.permute.xlu0 %920  ;;  %v2080_v58 = vpop.permute.xlu1 %952 }
 0x24d   :  { %v2082_v59 = vpop.permute.xlu0 %948  ;;  %v2084_v13 = vpop.permute.xlu1 %977 }
 0x251   :  { %v2086_v60 = vpop.permute.xlu0 %981  ;;  %v2088_v62 = vpop.permute.xlu1 %1009 }
 0x255   :  { %v2090_v0 = vpop.permute.xlu0 %1005  ;;  %v2092_v4 = vpop.permute.xlu1 %858 }
 0x259   :  { %v797_v6 = vpop.permute.xlu0 %796  ;;  %v828_v3 = vpop.permute.xlu1 %827 }
 0x25a   :  { %v833_v18 = vsel %vm831_vm15, %v826_v50, %v828_v3  ;;  %v1365_v50 = vunpack.i.h.bf16 %v2060_v37 }
 0x25d   :  { %v830_v8 = vpop.permute.xlu0 %829  ;;  %v2094_v9 = vpop.permute.xlu1 %885 }
 0x25e   :  { %v891_v36 = vsel %vm2278_vm6, %v884_v54, %v2094_v9  ;;  %v834_v37 = vsel %vm831_vm15, %v828_v3, %v830_v8 }
 0x261   :  { %v795_v11 = vpop.permute.xlu0 %794  ;;  %v919_v14 = vpop.permute.xlu1 %918 }
 0x262   :  { %v800_v15 = vsel %vm798_vm14, %v793_v2, %v795_v11  ;;  %v801_v2 = vsel %vm798_vm14, %v795_v11, %v797_v6  ;;  %v925_v42 = vsel %vm314_vm1, %v919_v14, %v2078_v57  ;;  %v924_v25 = vsel %vm314_vm1, %v2076_v55, %v919_v14 }
 0x263   :  { %1059 = vmatprep.subr.bf16.mxu1 %v800_v15 }
 0x264   :  { %1060 = vmatpush1.bf16.msra.mxu1 %v799_v17 }
 0x265   :  { %v888_v1 = vpop.permute.xlu0 %887  ;;  %1061 = vmatprep.subr.bf16.mxu1 %v833_v18  ;;  %v980_v22 = vpop.permute.xlu1 %979 }
 0x266   :  { %v986_v55 = vsel %vm2303_vm13, %v980_v22, %v2086_v60 }
 0x268   :  { %1062 = vmatpush1.bf16.msra.mxu1 %v832_v46 }
 0x269   :  { %v857_v27 = vpop.permute.xlu0 %856  ;;  %v2101_v28 = vpop.permute.xlu1 %811 }
 0x26a   :  { %v862_v33 = vsel %vm860_vm2, %v855_v53, %v857_v27  ;;  %v817_v40 = vsel %vm798_vm14, %v1360_v32, %v2101_v28  ;;  %v863_v26 = vsel %vm860_vm2, %v857_v27, %v2092_v4 }
 0x26b   :  { %1063 = vmatprep.subr.bf16.mxu1 %v862_v33  ;;  %1102 = vmatprep.subr.bf16.mxu0 %v817_v40 }
 0x26c   :  { %1064 = vmatpush1.bf16.msra.mxu1 %v861_v48  ;;  %1103 = vmatpush1.bf16.msra.mxu0 %v801_v2 }
 0x26d   :  { %v2111_v10 = vpop.permute.xlu0 %1367  ;;  %1065 = vmatprep.subr.bf16.mxu1 %v891_v36  ;;  %v2113_v15 = vpop.permute.xlu1 %840 }
 0x26e   :  { %v846_v16 = vsel %vm831_vm15, %v1365_v50, %v2113_v15 }
 0x26f   :  { %1104 = vmatprep.subr.bf16.mxu0 %v846_v16  ;;  %v1369_v16 = vunpack.i.l.bf16 %v2111_v10 }
 0x270   :  { %1066 = vmatpush1.bf16.msra.mxu1 %v890_v38  ;;  %1105 = vmatpush1.bf16.msra.mxu0 %v834_v37 }
 0x271   :  { %v951_v53 = vpop.permute.xlu0 %950  ;;  %1294 = vmatprep.subr.msk.bf16.mxu1 %vm1292_vm7, %v1293_v34  ;;  %v2125_v6 = vpop.permute.xlu1 %898  ;;  %vm1298_vm7 = vmpackc.low %vm1903_vm4, %vm1903_vm4 }
 0x272   :  { %v958_v30 = vsel %vm2277_vm10, %v951_v53, %v2080_v58  ;;  %v904_v11 = vsel %vm2278_vm6, %v2074_v49, %v2125_v6 }
 0x274   :  { %1297 = vmatpush1.bf16.msk.msra.mxu1 %vm1295_vm8, %v1296_v29  ;;  %v957_v29 = vsel %vm2277_vm10, %v2082_v59, %v951_v53  ;;  %v892_v59 = vsel %vm2278_vm6, %v2094_v9, %v888_v1  ;;  %vm2304_vm8 = vmmov %vm2303_vm13  ;;  %vm2305_vm13 = vcmask 891904   ;;  %v1370_v1 = vunpack.i.h.bf16 %v2111_v10 }
 0x275   :  { %v1008_v54 = vpop.permute.xlu0 %1007  ;;  %1069 = vmatprep.subr.bf16.mxu1 %v925_v42  ;;  %v935_v3 = vpop.permute.xlu1 %934  ;;  %v985_v4 = vsel %vm2304_vm8, %v2084_v13, %v980_v22  ;;  %vm1301_vm10 = vmpackc.low %vm1893_vm5, %vm1893_vm5  ;;  %v2170_v13 = vld [vmem:[%s2272_s3] ss:$8 sps:$4 sm:$0xff]   ;;  %s1471_s3 = smov [#allocation6]  }
 0x276   :  { %v1014_v17 = vsel %vm2305_vm13, %v1008_v54, %v2088_v62  ;;  %vm2306_vm6 = vmmov %vm2305_vm13  ;;  %v926_v32 = vsel %vm314_vm1, %v2078_v57, %v1370_v1  ;;  %s1254_s7 = sshll.u32 %s1471_s3, 4  ;;  %s1255_s7 = int_to_ptr.vmem [resolvable:$true] %s1254_s7 }
 0x277   :  { %v1013_v9 = vsel %vm2306_vm6, %v2090_v0, %v1008_v54  ;;  %s1428_s8 = scalar_lea.vmem %s1255_s7, 1536  ;;  %p1433_p9 = scmp.lt.s32.totalorder %s1255_s7, %s1255_s7 }
 0x278   :  { %1070 = vmatpush1.bf16.msra.mxu1 %v924_v25  ;;  %p1429_p8 = scmp.ne.s32.totalorder %s1255_s7, %s1428_s8  ;;  %p1434_p10 = scmp.lt.s32.totalorder %s1428_s8, %s1428_s8 }
 0x279   :  { %v870_v34 = vpop.permute.xlu0 %869  ;;  %1071 = vmatprep.subr.bf16.mxu1 %v958_v30  ;;  %v964_v8 = vpop.permute.xlu1 %963 }
 0x27a   :  { %v875_v21 = vsel %vm860_vm2, %v2067_v63, %v870_v34  ;;  %p1435_p11 = por %p1434_p10, %p1433_p9 }
 0x27b   :  { %1106 = vmatprep.subr.bf16.mxu0 %v875_v21 }
 0x27c   :  { %1072 = vmatpush1.bf16.msra.mxu1 %v957_v29  ;;  %1107 = vmatpush1.bf16.msra.mxu0 %v863_v26  ;;  %p1436_p12 = pnand %p1435_p11, %p1429_p8 }
 0x27d   :  { %v814_v14 = vpop.permute.xlu0 %813  ;;  %1073 = vmatprep.subr.bf16.mxu1 %v986_v55  ;;  %1108 = vmatprep.subr.bf16.mxu0 %v904_v11  ;;  %v872_v63 = vpop.permute.xlu1 %871 }
 0x27e   :  { %v818_v0 = vsel %vm798_vm14, %v2101_v28, %v814_v14 }
 0x280   :  { %1074 = vmatpush1.bf16.msra.mxu1 %v985_v4  ;;  %1109 = vmatpush1.bf16.msra.mxu0 %v892_v59 }
 0x281   :  { %v843_v49 = vpop.permute.xlu0 %842  ;;  %1075 = vmatprep.subr.bf16.mxu1 %v1014_v17  ;;  %1300 = vmatprep.subr.msk.bf16.mxu0 %vm1298_vm7, %v1299_v56  ;;  %v816_v18 = vpop.permute.xlu1 %815  ;;  %vm2311_vm7 = vmmov %vm2304_vm8 }
 0x282   :  { %v819_v44 = vsel %vm798_vm14, %v814_v14, %v816_v18  ;;  %v847_v46 = vsel %vm831_vm15, %v2113_v15, %v843_v49  ;;  %vm2308_vm14 = vcmask 908288  }
 0x284   :  { %1076 = vmatpush1.bf16.msra.mxu1 %v1013_v9  ;;  %1303 = vmatpush1.bf16.msk.msra.mxu0 %vm1301_vm10, %v1302_v51  ;;  %vm2310_vm10 = vmmov %vm2308_vm14 }
 0x285   :  { %v901_v52 = vpop.permute.xlu0 %900  ;;  %1145 = vmatprep.subr.bf16.mxu1 %v819_v44  ;;  %v845_v56 = vpop.permute.xlu1 %844  ;;  %vm2312_vm8 = vmmov %vm2310_vm10 }
 0x286   :  { %v848_v22 = vsel %vm831_vm15, %v843_v49, %v845_v56  ;;  %vm1304_vm15 = vmpackc.low %vm1967_vm12, %vm1967_vm12 }
 0x287   :  { %1092 = vmatmul.mubr.bf16.vlgmr.msra.gmra.mrb[4].mxu1 %v2170_v13  ;;  %vm2313_vm13 = vmmov %vm2312_vm8 }
 0x288   :  { %1146 = vmatpush1.bf16.msra.mxu1 %v818_v0  ;;  %1291 = vmatprep.mubr.msk.bf16.mxu1 %vm569_vm0, %v2028_v35  ;;  %v876_v35 = vsel %vm860_vm2, %v870_v34, %v872_v63  ;;  %vm2307_vm0 = vcmask 7168  }
 0x289   :  { %v937_v41 = vpop.permute.xlu0 %936  ;;  %1147 = vmatprep.subr.bf16.mxu1 %v848_v22  ;;  %v992_v47 = vpop.permute.xlu1 %991  ;;  %vm2309_vm6 = vmmov %vm2307_vm0 }
 0x28a   :  { %v942_v51 = vsel %vm314_vm1, %v935_v3, %v937_v41  ;;  %v905_v57 = vsel %vm2309_vm6, %v2125_v6, %v901_v52 }
 0x28b   :  { %1112 = vmatprep.subr.bf16.mxu0 %v942_v51 }
 0x28c   :  { %1113 = vmatpush1.bf16.msra.mxu0 %v926_v32  ;;  %1148 = vmatpush1.bf16.msra.mxu1 %v847_v46 }
 0x28d   :  { %v874_v27 = vpop.permute.xlu0 %873  ;;  %v903_v28 = vpop.permute.xlu1 %902 }
 0x28e   :  { %v877_v33 = vsel %vm860_vm2, %v872_v63, %v874_v27  ;;  %v906_v40 = vsel %vm2307_vm0, %v901_v52, %v903_v28  ;;  %vm1307_vm2 = vmpackc.low %vm1959_vm3, %vm1959_vm3 }
 0x28f   :  { %1149 = vmatprep.subr.bf16.mxu1 %v877_v33  ;;  %vm2314_vm0 = vmmov %vm2311_vm7 }
 0x290   :  { %1150 = vmatpush1.bf16.msra.mxu1 %v876_v35 }
 0x291   :  { %v966_v48 = vpop.permute.xlu0 %965  ;;  %1151 = vmatprep.subr.bf16.mxu1 %v906_v40  ;;  %v1020_v2 = vpop.permute.xlu1 %1019 }
 0x292   :  { %v971_v50 = vsel %vm2308_vm14, %v964_v8, %v966_v48  ;;  %vm2315_vm14 = vmmov %vm2314_vm0 }
 0x293   :  { %1114 = vmatprep.subr.bf16.mxu0 %v971_v50 }
 0x294   :  { %1152 = vmatpush1.bf16.msra.mxu1 %v905_v57 }
 0x295   :  { %v1373_v36 = vpop.permute.xlu0 %1372  ;;  %1306 = vmatprep.subr.msk.bf16.mxu1 %vm1304_vm15, %v1305_v31  ;;  %v939_v15 = vpop.permute.xlu1 %938  ;;  %vm2317_vm15 = vmmov %vm2314_vm0 }
 0x296   :  { %v1375_v38 = vunpack.i.h.bf16 %v1373_v36  ;;  %v944_v53 = vsel %vm314_vm1, %v939_v15, %v1369_v16  ;;  %v1374_v24 = vunpack.i.l.bf16 %v1373_v36  ;;  %v943_v42 = vsel %vm314_vm1, %v937_v41, %v939_v15 }
 0x297   :  { %vm2316_vm1 = vcmask 891904  }
 0x298   :  { %1309 = vmatpush1.bf16.msk.msra.mxu1 %vm1307_vm2, %v1308_v23  ;;  %v959_v37 = vsel %vm2310_vm10, %v2080_v58, %v1375_v38  ;;  %vm2318_vm6 = vmmov %vm2316_vm1 }
 0x299   :  { %v994_v6 = vpop.permute.xlu0 %993  ;;  %1115 = vmatpush1.bf16.msra.mxu0 %v959_v37  ;;  %1155 = vmatprep.subr.bf16.mxu1 %v944_v53  ;;  %v968_v19 = vpop.permute.xlu1 %967  ;;  %vm2319_vm2 = vmmov %vm2316_vm1 }
 0x29a   :  { %v999_v31 = vsel %vm2311_vm7, %v992_v47, %v994_v6  ;;  %v973_v10 = vsel %vm2312_vm8, %v968_v19, %v1374_v24  ;;  %v972_v58 = vsel %vm2313_vm13, %v966_v48, %v968_v19  ;;  %vm2320_vm10 = vmmov %vm2316_vm1 }
 0x29b   :  { %1116 = vmatprep.subr.bf16.mxu0 %v999_v31 }
 0x29c   :  { %1156 = vmatpush1.bf16.msra.mxu1 %v943_v42 }
 0x29d   :  { %v1378_v61 = vpop.permute.xlu0 %1377  ;;  %1157 = vmatprep.subr.bf16.mxu1 %v973_v10  ;;  %v996_v54 = vpop.permute.xlu1 %995 }
 0x29e   :  { %v1380_v20 = vunpack.i.h.bf16 %v1378_v61  ;;  %v1379_v23 = vunpack.i.l.bf16 %v1378_v61  ;;  %v1000_v8 = vsel %vm2317_vm15, %v994_v6, %v996_v54 }
 0x2a0   :  { %1158 = vmatpush1.bf16.msra.mxu1 %v972_v58  ;;  %v987_v3 = vsel %vm2314_vm0, %v2086_v60, %v1380_v20  ;;  %v1001_v25 = vsel %vm2315_vm14, %v996_v54, %v1379_v23 }
 0x2a1   :  { %v1022_v30 = vpop.permute.xlu0 %1021  ;;  %1117 = vmatpush1.bf16.msra.mxu0 %v987_v3  ;;  %1159 = vmatprep.subr.bf16.mxu1 %v1001_v25  ;;  %v1024_v26 = vpop.permute.xlu1 %1023 }
 0x2a2   :  { %v1027_v34 = vsel %vm2316_vm1, %v1020_v2, %v1022_v30  ;;  %v1028_v14 = vsel %vm2320_vm10, %v1022_v30, %v1024_v26 }
 0x2a3   :  { %1118 = vmatprep.subr.bf16.mxu0 %v1027_v34 }
 0x2a4   :  { %1160 = vmatpush1.bf16.msra.mxu1 %v1000_v8 }
 0x2a5   :  { %v1383_v21 = vpop.permute.xlu0 %1382 }
 0x2a6   :  { %v1385_v29 = vunpack.i.h.bf16 %v1383_v21  ;;  %v1384_v55 = vunpack.i.l.bf16 %v1383_v21 }
 0x2a8   :  { %v1015_v11 = vsel %vm2318_vm6, %v2088_v62, %v1385_v29  ;;  %v1029_v60 = vsel %vm2319_vm2, %v1024_v26, %v1384_v55 }
 0x2a9   :  { %1119 = vmatpush1.bf16.msra.mxu0 %v1015_v11  ;;  %1161 = vmatprep.subr.bf16.mxu1 %v1029_v60 }
 0x2aa   :  { %1162 = vmatpush1.bf16.msra.mxu1 %v1028_v14 }
 0x2ac   :  { %1135 = vmatmul.mubr.bf16.vlgmr.msra.gmra.mrb[8].mxu0 %v2170_v13 }
 0x2ad   :  { %1178 = vmatmul.mubr.bf16.vlgmr.msra.gmra.mrb[8].mxu1 %v2170_v13 }
 0x2b2   :  { %v1040_v63 = vpop.permute.xlu1 %1039 }
 0x2b6   :  { %v2225_v49 = vpop.permute.xlu0 %1044 }
 0x35a   :  { %v1093_v59 = vpop.f32.mrb[4].mxu1 }
 0x35b   :  { %v1094_v4 = vadd.f32 %v1093_v59, %v1040_v63  ;;  %v1095_v17 = vpop.f32.mrb[5].mxu1 }
 0x35c   :  { %v1096_v18 = vadd.f32 %v1095_v17, %v1040_v63  ;;  %v1097_v9 = vpop.f32.mrb[6].mxu1 }
 0x35d   :  { %vm1188_vm7 = vcmp.ge.f32.partialorder %v1094_v4, 0.0  ;;  %v1200_v62 = vmul.f32 0.2, %v1094_v4  ;;  %v1098_v44 = vadd.f32 %v1097_v9, %v2225_v49  ;;  %v1099_v52 = vpop.f32.mrb[7].mxu1 }
 0x35e   :  { %vm1189_vm8 = vcmp.ge.f32.partialorder %v1096_v18, 0.0  ;;  %v1201_v56 = vmul.f32 0.2, %v1096_v18  ;;  %v1100_v1 = vadd.f32 %v1099_v52, %v2225_v49 }
 0x35f   :  { %v1212_v0 = vsel %vm1188_vm7, %v1094_v4, %v1200_v62  ;;  %vm1194_vm13 = vcmp.ge.f32.partialorder %v1098_v44, 0.0  ;;  %v1206_v13 = vmul.f32 0.2, %v1098_v44 }
 0x360   :  { %v1224_v22 = vsel %vm1794_vm9, %v1212_v0, 0.0  ;;  %v1213_v41 = vsel %vm1189_vm8, %v1096_v18, %v1201_v56  ;;  %vm1195_vm0 = vcmp.ge.f32.partialorder %v1100_v1, 0.0  ;;  %v1207_v47 = vmul.f32 0.2, %v1100_v1 }
 0x361   :  { %1236 = vst [vmem:[#allocation6] sm:$0xff] %v1224_v22  ;;  %v1225_v51 = vsel %vm1800_vm11, %v1213_v41, 0.0  ;;  %v1218_v46 = vsel %vm1194_vm13, %v1098_v44, %v1206_v13 }
 0x362   :  { %1237 = vst [vmem:[#allocation6 + $0x8] sm:$0xff] %v1225_v51  ;;  %v1230_v32 = vsel %vm1794_vm9, %v1218_v46, 0.0  ;;  %v1219_v27 = vsel %vm1195_vm0, %v1100_v1, %v1207_v47 }
 0x363   :  { %1239 = vst [vmem:[#allocation6 + $0x18] sm:$0xff] %v1230_v32  ;;  %v1231_v28 = vsel %vm1800_vm11, %v1219_v27, 0.0 }
 0x364   :  { %1240 = vst [vmem:[#allocation6 + $0x20] sm:$0xff] %v1231_v28 }
 0x37f   :  { %v1136_v33 = vpop.f32.mrb[8].mxu0 }
 0x380   :  { %v1137_v35 = vadd.f32 %v1136_v33, %v1040_v63  ;;  %v1138_v40 = vpop.f32.mrb[9].mxu0  ;;  %v1179_v48 = vpop.f32.mrb[8].mxu1 }
 0x381   :  { %v1139_v2 = vadd.f32 %v1138_v40, %v1040_v63  ;;  %v1180_v50 = vadd.f32 %v1179_v48, %v1040_v63  ;;  %v1140_v57 = vpop.f32.mrb[10].mxu0  ;;  %v1181_v36 = vpop.f32.mrb[9].mxu1 }
 0x382   :  { %vm1190_vm14 = vcmp.ge.f32.partialorder %v1137_v35, 0.0  ;;  %v1202_v15 = vmul.f32 0.2, %v1137_v35  ;;  %v1141_v16 = vadd.f32 %v1140_v57, %v2225_v49  ;;  %v1182_v12 = vadd.f32 %v1181_v36, %v1040_v63  ;;  %v1142_v38 = vpop.f32.mrb[11].mxu0  ;;  %v1183_v37 = vpop.f32.mrb[10].mxu1 }
 0x383   :  { %vm1191_vm9 = vcmp.ge.f32.partialorder %v1139_v2, 0.0  ;;  %v1203_v53 = vmul.f32 0.2, %v1139_v2  ;;  %vm1192_vm1 = vcmp.ge.f32.partialorder %v1180_v50, 0.0  ;;  %v1204_v5 = vmul.f32 0.2, %v1180_v50 }
 0x384   :  { %v1214_v6 = vsel %vm1190_vm14, %v1137_v35, %v1202_v15  ;;  %vm1196_vm11 = vcmp.ge.f32.partialorder %v1141_v16, 0.0  ;;  %v1208_v19 = vmul.f32 0.2, %v1141_v16  ;;  %vm1193_vm15 = vcmp.ge.f32.partialorder %v1182_v12, 0.0  ;;  %v1185_v24 = vpop.f32.mrb[11].mxu1 }
 0x385   :  { %v1226_v31 = vsel %vm1893_vm5, %v1214_v6, 0.0  ;;  %v1215_v42 = vsel %vm1191_vm9, %v1139_v2, %v1203_v53  ;;  %v1216_v10 = vsel %vm1192_vm1, %v1180_v50, %v1204_v5  ;;  %v1205_v61 = vmul.f32 0.2, %v1182_v12 }
 0x386   :  { %1238 = vst [vmem:[#allocation6 + $0x10] sm:$0xff] %v1226_v31  ;;  %v1227_v20 = vsel %vm1903_vm4, %v1215_v42, 0.0  ;;  %v1228_v23 = vsel %vm1959_vm3, %v1216_v10, 0.0  ;;  %v1220_v58 = vsel %vm1196_vm11, %v1141_v16, %v1208_v19  ;;  %v1143_v54 = vadd.f32 %v1142_v38, %v2225_v49 }
 0x387   :  { %1243 = vst [vmem:[#allocation6 + $0x30] sm:$0xff] %v1227_v20  ;;  %1244 = vst [vmem:[#allocation6 + $0x38] sm:$0xff] %v1228_v23  ;;  %v1232_v3 = vsel %vm1893_vm5, %v1220_v58, 0.0  ;;  %v1217_v25 = vsel %vm1193_vm15, %v1182_v12, %v1205_v61  ;;  %v1184_v30 = vadd.f32 %v1183_v37, %v2225_v49  ;;  %v1186_v34 = vadd.f32 %v1185_v24, %v2225_v49 }
 0x388   :  { %1241 = vst [vmem:[#allocation6 + $0x28] sm:$0xff] %v1232_v3  ;;  %v1229_v8 = vsel %vm1967_vm12, %v1217_v25, 0.0  ;;  %vm1197_vm6 = vcmp.ge.f32.partialorder %v1143_v54, 0.0  ;;  %v1209_v21 = vmul.f32 0.2, %v1143_v54 }
 0x389   :  { %1245 = vst [vmem:[#allocation6 + $0x40] sm:$0xff] %v1229_v8  ;;  %vm1198_vm2 = vcmp.ge.f32.partialorder %v1184_v30, 0.0  ;;  %v1210_v26 = vmul.f32 0.2, %v1184_v30  ;;  %vm1199_vm10 = vcmp.ge.f32.partialorder %v1186_v34, 0.0 }
 0x38a   :  { %v1211_v29 = vmul.f32 0.2, %v1186_v34  ;;  %v1221_v39 = vsel %vm1197_vm6, %v1143_v54, %v1209_v21 }
 0x38b   :  { %v1233_v55 = vsel %vm1903_vm4, %v1221_v39, 0.0  ;;  %v1222_v11 = vsel %vm1198_vm2, %v1184_v30, %v1210_v26 }
 0x38c   :  { %v1223_v60 = vsel %vm1199_vm10, %v1186_v34, %v1211_v29  ;;  %1246 = vst [vmem:[#allocation6 + $0x48] sm:$0xff] %v1233_v55  ;;  %v1234_v14 = vsel %vm1959_vm3, %v1222_v11, 0.0 }
 0x38d   :  { %v1235_v63 = vsel %vm1967_vm12, %v1223_v60, 0.0  ;;  %1247 = vst [vmem:[#allocation6 + $0x50] sm:$0xff] %v1234_v14 }
 0x38e   :  { %1248 = vst [vmem:[#allocation6 + $0x58] sm:$0xff] %v1235_v63 }
 0x38f   :  { %1439 = shalt.err (!%p1436_p12)
}
 0x390   :  { %s1440_s10 = scalar_lea.hbm %s2274_s5, 1536 }
 0x391   :  { %p1441_p13 = scmp.ne.s32.totalorder %s2274_s5, %s1440_s10  ;;  %p1444_p0 = scmp.lt.u32.totalorder %s1440_s10, %s2274_s5 }
 0x393   :  { %p1446_p1 = pnand %p1444_p0, %p1441_p13 }
 0x395   :  { %1449 = shalt.err (!%p1446_p1)
}
 0x396   :  { %s1472_s15 = smov 384   ;;  %s1473_s16 = smov 24  }
 0x397   :  { %1260 = dma.vmem_to_hbm [thread:$0]  %s1255_s7, 1536, %s2274_s5, [#allocation5], %s1472_s15, %s1472_s15, %s1473_s16  }
 0x398   :  { %1452 = dma.done.wait [#allocation5], 1536  }
 0x399   :  { %1453 = vsyncadd [#allocation5], 4294965760 }
 0x39a   :  { %1264 = vsyncpa [#allocation4], 1 }
 0x39b   :  { %1265 = vsyncpa [#allocation5], 1 }

</bundles_post_ra>
